<compile_context>
chip_gen: v7x
topology: tpu7x:2x2x1
jax: 0.10.0
libtpu: 0.0.40
codegen_flags: <defaults>
</compile_context>

<pallas_src>
import functools

import jax
import jax.numpy as jnp
from jax.experimental import pallas as pl
from jax.experimental.pallas import tpu as pltpu


# --------------------------------------------------------------------------
# Wrapper-side weight "layout plumbing" (all tiny, weight-sized tensors).
# --------------------------------------------------------------------------
def _interp_matrix(n_in, n_out):
    """Bilinear align_corners=True interpolation matrix A: out = A @ in."""
    denom = max(n_out - 1, 1)
    pos = jnp.arange(n_out, dtype=jnp.float32) * (n_in - 1) / denom
    lo = jnp.floor(pos).astype(jnp.int32)
    hi = jnp.minimum(lo + 1, n_in - 1)
    frac = pos - lo.astype(jnp.float32)
    eye = jnp.eye(n_in, dtype=jnp.float32)
    return (1.0 - frac)[:, None] * eye[lo] + frac[:, None] * eye[hi]


def _deconv_weights(w_pt, w2, c4):
    """ConvTranspose2d(C4, C4, k=4, s=4) as one matmul.

    (H2, W2*C4) @ Wdec -> (H2, 4*W*C4) with columns ordered (di, w=4*j+dj, co).
    """
    w_r = jnp.transpose(w_pt, (0, 2, 3, 1))                 # (ci, di, dj, co)
    eye = jnp.eye(w2, dtype=w_pt.dtype)
    blocks = [jnp.kron(eye, w_r[:, di].reshape(c4, 4 * c4)) for di in range(4)]
    return jnp.concatenate(blocks, axis=1)                  # (W2*C4, 16*W2*C4)


def _banded_conv_weights(w_hwio, n_groups, w_out):
    """Fold the 3x3 W-axis structure into the weight.

    The conv then becomes 3 row-slab matmuls:
        acc[h, w*Cout+co] += slab_dy[h, g*(W+2)*Cg + wi*Cg + c] * Wb[dy][row, col]
    with a lane-dense (w, cout) output layout.
    Returns (3, n_groups*(W+2)*Cg, W*Cout).
    """
    kh, kw, cin, cout = w_hwio.shape
    cg = cin // n_groups
    wp = w_out + 2
    wi = jnp.arange(wp)[None, :, None]
    w = jnp.arange(w_out)[None, None, :]
    dx = jnp.arange(kw)[:, None, None]
    place = (wi == w + dx).astype(jnp.float32)               # (kw, wp, w_out)
    wg = w_hwio.reshape(kh, kw, n_groups, cg, cout)
    wb = jnp.einsum("xiw,yxgco->ygicwo", place, wg)
    return wb.reshape(kh, n_groups * wp * cg, w_out * cout)


# --------------------------------------------------------------------------
# Fused Pallas kernel (one grid step per batch element).
# --------------------------------------------------------------------------
def up1_kernel(x1_ref, x2_ref, x3_ref, x4_ref,
               ay1_ref, bx1_ref, ay3_ref, bx3_ref,
               wdec_ref, bdec_ref,
               w1b_ref, s1_ref, sh1_ref,
               w2b_ref, s2_ref, sh2_ref,
               o_ref, xcat_ref, mid_ref, *, C4, Cout):
    f32, bf16 = jnp.float32, jnp.bfloat16
    H1 = x1_ref.shape[1]
    W1 = x1_ref.shape[2] // C4
    H2 = x2_ref.shape[1]
    H = x4_ref.shape[1]
    W = x4_ref.shape[2] // C4
    seg = (W + 2) * C4                       # per-source column segment in xcat

    # zero-init padded scratches: provides the conv halo and the F.pad zeros.
    xcat_ref[...] = jnp.zeros(xcat_ref.shape, f32)
    mid_ref[...] = jnp.zeros(mid_ref.shape, f32)

    # ---- source 0: x4 (identity, full resolution) ------------------------
    xcat_ref[1:1 + H, C4:(W + 1) * C4] = x4_ref[0]

    # ---- source 1: x3 bilinear x2 (align_corners) as two matmuls ---------
    t3 = jnp.dot(ay3_ref[...], x3_ref[0], preferred_element_type=f32)
    u3 = jnp.dot(t3, bx3_ref[...], preferred_element_type=f32)
    xcat_ref[1:1 + H, seg + C4:seg + (W + 1) * C4] = u3

    # ---- source 2: x2 ConvTranspose2d(k=4, s=4) as one bf16 matmul -------
    yd = jnp.dot(x2_ref[0].astype(bf16), wdec_ref[...],
                 preferred_element_type=f32) + bdec_ref[...]
    for i in range(H2):                      # static scatter of the 4 row phases
        for di in range(4):
            r = 1 + 4 * i + di
            xcat_ref[r:r + 1, 2 * seg + C4:2 * seg + (W + 1) * C4] = (
                yd[i:i + 1, di * W * C4:(di + 1) * W * C4])

    # ---- source 3: x1 bilinear x2 + F.pad (static pad / crop) ------------
    t1 = jnp.dot(ay1_ref[...], x1_ref[0], preferred_element_type=f32)
    u1 = jnp.dot(t1, bx1_ref[...], preferred_element_type=f32)
    diffY, diffX = H - 2 * H1, W - 2 * W1
    top, left = diffY // 2, diffX // 2
    bottom, right = diffY - top, diffX - left
    sr0, sr1 = max(0, -top), 2 * H1 - max(0, -bottom)
    sw0, sw1 = max(0, -left), 2 * W1 - max(0, -right)
    dr0, dw0 = max(0, top), max(0, left)
    nr, nw = sr1 - sr0, sw1 - sw0
    xcat_ref[1 + dr0:1 + dr0 + nr,
             3 * seg + (1 + dw0) * C4:3 * seg + (1 + dw0 + nw) * C4] = (
        u1[sr0:sr1, sw0 * C4:sw1 * C4])

    # ---- (3x3 conv -> folded eval BN -> ReLU) as banded row-slab matmuls --
    def banded_conv(src_ref, wb_ref, s_ref, sh_ref):
        acc = jnp.dot(src_ref[0:H, :].astype(bf16), wb_ref[0],
                      preferred_element_type=f32)
        acc = acc + jnp.dot(src_ref[1:1 + H, :].astype(bf16), wb_ref[1],
                            preferred_element_type=f32)
        acc = acc + jnp.dot(src_ref[2:2 + H, :].astype(bf16), wb_ref[2],
                            preferred_element_type=f32)
        return jnp.maximum(acc * s_ref[...] + sh_ref[...], 0.0)   # f32 epilogue

    y1 = banded_conv(xcat_ref, w1b_ref, s1_ref, sh1_ref)   # (H, W*Cout) f32
    mid_ref[1:1 + H, Cout:(W + 1) * Cout] = y1             # lane-dense mid

    # Dropout2d(p=0.2) is identity in eval mode.
    o_ref[0] = banded_conv(mid_ref, w2b_ref, s2_ref, sh2_ref)   # lane-dense store


# --------------------------------------------------------------------------
# Public wrapper: NCHW in / NCHW out.
# --------------------------------------------------------------------------
def up1_forward(params, x1, x2, x3, x4):
    f32, bf16 = jnp.float32, jnp.bfloat16

    def slab(t):  # NCHW -> row-slab (N, H, W*C); the reshape is free.
        n, c, h, w = t.shape
        return jnp.transpose(t, (0, 2, 3, 1)).reshape(n, h, w * c), h, w, c

    x1s, H1, W1, C4 = slab(x1)
    x2s, H2, W2, _ = slab(x2)
    x3s, H3, W3, _ = slab(x3)
    x4s, H, W, _ = slab(x4)
    N = x4.shape[0]
    Cout = params["w1"].shape[-1]
    assert 2 * H3 == H and 2 * W3 == W, "x3 upsample must match x4 resolution"
    assert 4 * H2 == H and 4 * W2 == W, "x2 up4 must match x4 resolution"

    # bilinear x2 (align_corners=True) as matrices: rows, then cols (kron I_C)
    ay1 = _interp_matrix(H1, 2 * H1)
    bx1 = jnp.kron(_interp_matrix(W1, 2 * W1).T, jnp.eye(C4, dtype=f32))
    ay3 = _interp_matrix(H3, 2 * H3)
    bx3 = jnp.kron(_interp_matrix(W3, 2 * W3).T, jnp.eye(C4, dtype=f32))

    # ConvTranspose2d(k=4, s=4) as a single matmul (bf16 MXU operand).
    wdec = _deconv_weights(params["up4_w"], W2, C4).astype(bf16)
    bdec = jnp.tile(params["up4_b"], 4 * W).reshape(1, 4 * W * C4).astype(f32)

    # Fold eval-mode BatchNorm into a per-channel scale/shift epilogue.
    def bn_fold(b, g, be, rm, rv, eps=1e-5):
        s = g / jnp.sqrt(rv + eps)
        return s, be + (b - rm) * s

    s1, sh1 = bn_fold(params["b1"], params["g1"], params["be1"],
                      params["rm1"], params["rv1"])
    s2, sh2 = bn_fold(params["b2"], params["g2"], params["be2"],
                      params["rm2"], params["rv2"])

    w1b = _banded_conv_weights(params["w1"], 4, W).astype(bf16)
    w2b = _banded_conv_weights(params["w2"], 1, W).astype(bf16)
    s1r = jnp.tile(s1, W).reshape(1, W * Cout).astype(f32)
    sh1r = jnp.tile(sh1, W).reshape(1, W * Cout).astype(f32)
    s2r = jnp.tile(s2, W).reshape(1, W * Cout).astype(f32)
    sh2r = jnp.tile(sh2, W).reshape(1, W * Cout).astype(f32)

    seg = (W + 2) * C4
    nb = lambda a: a.size * a.dtype.itemsize
    block_bytes = (sum(nb(a) // N for a in (x1s, x2s, x3s, x4s))
                   + sum(nb(a) for a in (ay1, bx1, ay3, bx3, wdec, bdec,
                                         w1b, s1r, sh1r, w2b, s2r, sh2r))
                   + H * W * Cout * 4
                   + (H + 2) * 4 * seg * 4 + (H + 2) * (W + 2) * Cout * 4)
    vmem_limit = int(min(64 * 2 ** 20, max(4 * 2 ** 20, 3 * block_bytes)))

    kernel = functools.partial(up1_kernel, C4=C4, Cout=Cout)

    out = pl.pallas_call(
        kernel,
        out_shape=jax.ShapeDtypeStruct((N, H, W * Cout), f32),
        grid=(N,),
        in_specs=[
            pl.BlockSpec((1, H1, W1 * C4), lambda n: (n, 0, 0)),
            pl.BlockSpec((1, H2, W2 * C4), lambda n: (n, 0, 0)),
            pl.BlockSpec((1, H3, W3 * C4), lambda n: (n, 0, 0)),
            pl.BlockSpec((1, H, W * C4), lambda n: (n, 0, 0)),
            pl.BlockSpec((2 * H1, H1), lambda n: (0, 0)),
            pl.BlockSpec((W1 * C4, 2 * W1 * C4), lambda n: (0, 0)),
            pl.BlockSpec((2 * H3, H3), lambda n: (0, 0)),
            pl.BlockSpec((W3 * C4, 2 * W3 * C4), lambda n: (0, 0)),
            pl.BlockSpec((W2 * C4, 4 * W * C4), lambda n: (0, 0)),
            pl.BlockSpec((1, 4 * W * C4), lambda n: (0, 0)),
            pl.BlockSpec((3, 4 * seg, W * Cout), lambda n: (0, 0, 0)),
            pl.BlockSpec((1, W * Cout), lambda n: (0, 0)),
            pl.BlockSpec((1, W * Cout), lambda n: (0, 0)),
            pl.BlockSpec((3, (W + 2) * Cout, W * Cout), lambda n: (0, 0, 0)),
            pl.BlockSpec((1, W * Cout), lambda n: (0, 0)),
            pl.BlockSpec((1, W * Cout), lambda n: (0, 0)),
        ],
        out_specs=pl.BlockSpec((1, H, W * Cout), lambda n: (n, 0, 0)),
        scratch_shapes=[
            pltpu.VMEM((H + 2, 4 * seg), f32),          # concat + halo scratch
            pltpu.VMEM((H + 2, (W + 2) * Cout), f32),   # conv1 output + halo
        ],
        compiler_params=pltpu.CompilerParams(
            dimension_semantics=("parallel",),
            vmem_limit_bytes=vmem_limit,
        ),
    )(x1s, x2s, x3s, x4s, ay1, bx1, ay3, bx3, wdec, bdec,
      w1b, s1r, sh1r, w2b, s2r, sh2r)

    # (N, H, W*Cout) -> NCHW.  The reshape is contiguous (free); the transpose
    # is the PyTorch-boundary layout glue.
    return jnp.transpose(out.reshape(N, H, W, Cout), (0, 3, 1, 2))


# --------------------------------------------------------------------------
# Pure-JAX f32 reference (independent path, for the self-check).
# --------------------------------------------------------------------------
def bilinear_up2_align_corners(x_nhwc):
    N, H, W, C = x_nhwc.shape
    Ho, Wo = 2 * H, 2 * W

    def axis_coords(n_in, n_out):
        pos = jnp.arange(n_out, dtype=jnp.float32) * (n_in - 1) / (n_out - 1)
        lo = jnp.floor(pos).astype(jnp.int32)
        hi = jnp.minimum(lo + 1, n_in - 1)
        return lo, hi, pos - lo.astype(jnp.float32)

    y0, y1, fy = axis_coords(H, Ho)
    x0, x1, fx = axis_coords(W, Wo)
    rows = (x_nhwc[:, y0, :, :] * (1.0 - fy)[None, :, None, None]
            + x_nhwc[:, y1, :, :] * fy[None, :, None, None])
    return (rows[:, :, x0, :] * (1.0 - fx)[None, None, :, None]
            + rows[:, :, x1, :] * fx[None, None, :, None])


def _conv3x3_bn_relu_ref(x, w, b, g, be, rm, rv, eps=1e-5):
    y = jax.lax.conv_general_dilated(
        x, w, window_strides=(1, 1), padding=((1, 1), (1, 1)),
        dimension_numbers=("NHWC", "HWIO", "NHWC")) + b
    y = (y - rm) / jnp.sqrt(rv + eps) * g + be
    return jnp.maximum(y, 0.0)


def up1_forward_ref(params, x1, x2, x3, x4):
    to_nhwc = lambda t: jnp.transpose(t, (0, 2, 3, 1))
    x1, x2, x3, x4 = map(to_nhwc, (x1, x2, x3, x4))
    x1u = bilinear_up2_align_corners(x1)
    diffY = x4.shape[1] - x1u.shape[1]
    diffX = x4.shape[2] - x1u.shape[2]
    x1u = jnp.pad(x1u, ((0, 0), (diffY // 2, diffY - diffY // 2),
                        (diffX // 2, diffX - diffX // 2), (0, 0)))
    N, H, W, Cin = x2.shape
    Cout = params["up4_w"].shape[1]
    x2u = (jnp.einsum("nijc,codk->nidjko", x2, params["up4_w"])
           .reshape(N, 4 * H, 4 * W, Cout) + params["up4_b"])
    x3u = bilinear_up2_align_corners(x3)
    x = jnp.concatenate([x4, x3u, x2u, x1u], axis=-1)
    y = _conv3x3_bn_relu_ref(x, params["w1"], params["b1"], params["g1"],
                             params["be1"], params["rm1"], params["rv1"])
    y = _conv3x3_bn_relu_ref(y, params["w2"], params["b2"], params["g2"],
                             params["be2"], params["rm2"], params["rv2"])
    return jnp.transpose(y, (0, 3, 1, 2))


# --------------------------------------------------------------------------
def make_params(key, in_channels, out_channels):
    c4 = in_channels // 4
    ks = jax.random.split(key, 12)
    n = lambda k, s, sc=0.1: sc * jax.random.normal(k, s, jnp.float32)
    return {
        # ConvTranspose2d(in//4, in//4, k=4, s=4): weight (Cin, Cout, 4, 4)
        "up4_w": n(ks[0], (c4, c4, 4, 4)),
        "up4_b": n(ks[1], (c4,)),
        # HFR conv1: 3x3, in_channels -> out_channels (HWIO layout)
        "w1": n(ks[2], (3, 3, in_channels, out_channels)),
        "b1": n(ks[3], (out_channels,)),
        "g1": 1.0 + n(ks[4], (out_channels,)),
        "be1": n(ks[5], (out_channels,)),
        "rm1": n(ks[6], (out_channels,)),
        "rv1": 1.0 + 0.1 * jax.random.uniform(ks[7], (out_channels,)),
        # HFR conv2: 3x3, out_channels -> out_channels
        "w2": n(ks[8], (3, 3, out_channels, out_channels)),
        "b2": n(ks[9], (out_channels,)),
        "g2": 1.0 + n(ks[10], (out_channels,)),
        "be2": n(ks[11], (out_channels,)),
        "rm2": jnp.zeros((out_channels,), jnp.float32),
        "rv2": jnp.ones((out_channels,), jnp.float32),
    }


if __name__ == "__main__":
    in_channels, out_channels = 16, 8   # each of x1..x4 has in_channels//4 = 4 channels
    B, H = 2, 16

    key = jax.random.PRNGKey(0)
    kx1, kx2, kx3, kx4, kp = jax.random.split(key, 5)
    x1 = jax.random.normal(kx1, (B, 4, H // 2, H // 2), jnp.float32)  # -> up x2
    x2 = jax.random.normal(kx2, (B, 4, H // 4, H // 4), jnp.float32)  # -> up4 (x4)
    x3 = jax.random.normal(kx3, (B, 4, H // 2, H // 2), jnp.float32)  # -> up x2
    x4 = jax.random.normal(kx4, (B, 4, H, H), jnp.float32)            # full res

    params = make_params(kp, in_channels, out_channels)

    out = jax.block_until_ready(up1_forward(params, x1, x2, x3, x4))
    assert out.shape == (B, out_channels, H, H), out.shape
    assert bool(jnp.all(jnp.isfinite(out)))

    ref = jax.block_until_ready(up1_forward_ref(params, x1, x2, x3, x4))
    err = float(jnp.max(jnp.abs(out - ref)))
    assert jnp.allclose(out, ref, atol=3e-2, rtol=3e-2), err

    print("KERNEL_OK")
</pallas_src>

<mosaic_0001>
module attributes {stable_mosaic.version = 11 : i64} {
  func.func @up1_kernel(%arg0: i32, %arg1: memref<1x8x32xf32, #tpu.memory_space<vmem>>, %arg2: memref<1x4x16xf32, #tpu.memory_space<vmem>>, %arg3: memref<1x8x32xf32, #tpu.memory_space<vmem>>, %arg4: memref<1x16x64xf32, #tpu.memory_space<vmem>>, %arg5: memref<16x8xf32, #tpu.memory_space<vmem>>, %arg6: memref<32x64xf32, #tpu.memory_space<vmem>>, %arg7: memref<16x8xf32, #tpu.memory_space<vmem>>, %arg8: memref<32x64xf32, #tpu.memory_space<vmem>>, %arg9: memref<16x256xbf16, #tpu.memory_space<vmem>>, %arg10: memref<1x256xf32, #tpu.memory_space<vmem>>, %arg11: memref<3x288x128xbf16, #tpu.memory_space<vmem>>, %arg12: memref<1x128xf32, #tpu.memory_space<vmem>>, %arg13: memref<1x128xf32, #tpu.memory_space<vmem>>, %arg14: memref<3x144x128xbf16, #tpu.memory_space<vmem>>, %arg15: memref<1x128xf32, #tpu.memory_space<vmem>>, %arg16: memref<1x128xf32, #tpu.memory_space<vmem>>, %arg17: memref<1x16x128xf32, #tpu.memory_space<vmem>>, %arg18: memref<18x288xf32, #tpu.memory_space<vmem>>, %arg19: memref<18x144xf32, #tpu.memory_space<vmem>>) attributes {dimension_semantics = [#tpu.dimension_semantics<parallel>], iteration_bounds = array<i64: 2>, scalar_prefetch = 0 : i64, scratch_operands = 2 : i64, tpu.core_type = #tpu.core_type<tc>, window_params = [{transform_indices = @transform_0, window_bounds = array<i64: 1, 8, 32>}, {transform_indices = @transform_1, window_bounds = array<i64: 1, 4, 16>}, {transform_indices = @transform_2, window_bounds = array<i64: 1, 8, 32>}, {transform_indices = @transform_3, window_bounds = array<i64: 1, 16, 64>}, {pipeline_mode = #tpu.pipeline_mode<synchronous>, transform_indices = @transform_4, window_bounds = array<i64: 16, 8>}, {pipeline_mode = #tpu.pipeline_mode<synchronous>, transform_indices = @transform_5, window_bounds = array<i64: 32, 64>}, {pipeline_mode = #tpu.pipeline_mode<synchronous>, transform_indices = @transform_6, window_bounds = array<i64: 16, 8>}, {pipeline_mode = #tpu.pipeline_mode<synchronous>, transform_indices = @transform_7, window_bounds = array<i64: 32, 64>}, {pipeline_mode = #tpu.pipeline_mode<synchronous>, transform_indices = @transform_8, window_bounds = array<i64: 16, 256>}, {pipeline_mode = #tpu.pipeline_mode<synchronous>, transform_indices = @transform_9, window_bounds = array<i64: 1, 256>}, {pipeline_mode = #tpu.pipeline_mode<synchronous>, transform_indices = @transform_10, window_bounds = array<i64: 3, 288, 128>}, {pipeline_mode = #tpu.pipeline_mode<synchronous>, transform_indices = @transform_11, window_bounds = array<i64: 1, 128>}, {pipeline_mode = #tpu.pipeline_mode<synchronous>, transform_indices = @transform_12, window_bounds = array<i64: 1, 128>}, {pipeline_mode = #tpu.pipeline_mode<synchronous>, transform_indices = @transform_13, window_bounds = array<i64: 3, 144, 128>}, {pipeline_mode = #tpu.pipeline_mode<synchronous>, transform_indices = @transform_14, window_bounds = array<i64: 1, 128>}, {pipeline_mode = #tpu.pipeline_mode<synchronous>, transform_indices = @transform_15, window_bounds = array<i64: 1, 128>}, {transform_indices = @transform_16, window_bounds = array<i64: 1, 16, 128>}]} {
    %cst = arith.constant 0.000000e+00 : f32
    %0 = vector.broadcast %cst : f32 to vector<18x288xf32>
    %c0 = arith.constant 0 : index
    %c0_0 = arith.constant 0 : index
    %1 = vector.load %arg18[%c0, %c0_0] : memref<18x288xf32, #tpu.memory_space<vmem>>, vector<18x288xf32>
    tpu.vector_store %arg18[%c0, %c0_0], %0 {strides = array<i32>} : memref<18x288xf32, #tpu.memory_space<vmem>>, vector<18x288xf32>,
    %cst_1 = arith.constant 0.000000e+00 : f32
    %2 = vector.broadcast %cst_1 : f32 to vector<18x144xf32>
    %c0_2 = arith.constant 0 : index
    %c0_3 = arith.constant 0 : index
    %3 = vector.load %arg19[%c0_2, %c0_3] : memref<18x144xf32, #tpu.memory_space<vmem>>, vector<18x144xf32>
    tpu.vector_store %arg19[%c0_2, %c0_3], %2 {strides = array<i32>} : memref<18x144xf32, #tpu.memory_space<vmem>>, vector<18x144xf32>,
    %c0_4 = arith.constant 0 : index
    %c0_5 = arith.constant 0 : index
    %c0_6 = arith.constant 0 : index
    %4 = vector.load %arg4[%c0_4, %c0_5, %c0_6] : memref<1x16x64xf32, #tpu.memory_space<vmem>>, vector<1x16x64xf32>
    %5 = vector.shape_cast %4 : vector<1x16x64xf32> to vector<16x64xf32>
    %c1 = arith.constant 1 : index
    %c4 = arith.constant 4 : index
    %6 = vector.load %arg18[%c1, %c4] : memref<18x288xf32, #tpu.memory_space<vmem>>, vector<16x64xf32>
    tpu.vector_store %arg18[%c1, %c4], %5 {strides = array<i32>} : memref<18x288xf32, #tpu.memory_space<vmem>>, vector<16x64xf32>,
    %c0_7 = arith.constant 0 : index
    %c0_8 = arith.constant 0 : index
    %7 = vector.load %arg7[%c0_7, %c0_8] : memref<16x8xf32, #tpu.memory_space<vmem>>, vector<16x8xf32>
    %c0_9 = arith.constant 0 : index
    %c0_10 = arith.constant 0 : index
    %c0_11 = arith.constant 0 : index
    %8 = vector.load %arg3[%c0_9, %c0_10, %c0_11] : memref<1x8x32xf32, #tpu.memory_space<vmem>>, vector<1x8x32xf32>
    %9 = vector.shape_cast %8 : vector<1x8x32xf32> to vector<8x32xf32>
    %cst_12 = arith.constant dense<0.000000e+00> : vector<16x32xf32>
    %10 = tpu.matmul %7, %9, %cst_12 {dimension_numbers = #tpu.dot_dimension_numbers<[1], [0], [0], [1], [0, 0, 1, 1], [], []>} : vector<16x8xf32>, vector<8x32xf32>, vector<16x32xf32> -> vector<16x32xf32>
    %c0_13 = arith.constant 0 : index
    %c0_14 = arith.constant 0 : index
    %11 = vector.load %arg8[%c0_13, %c0_14] : memref<32x64xf32, #tpu.memory_space<vmem>>, vector<32x64xf32>
    %cst_15 = arith.constant dense<0.000000e+00> : vector<16x64xf32>
    %12 = tpu.matmul %10, %11, %cst_15 {dimension_numbers = #tpu.dot_dimension_numbers<[1], [0], [0], [1], [0, 0, 1, 1], [], []>} : vector<16x32xf32>, vector<32x64xf32>, vector<16x64xf32> -> vector<16x64xf32>
    %c1_16 = arith.constant 1 : index
    %c76 = arith.constant 76 : index
    %13 = vector.load %arg18[%c1_16, %c76] : memref<18x288xf32, #tpu.memory_space<vmem>>, vector<16x64xf32>
    tpu.vector_store %arg18[%c1_16, %c76], %12 {strides = array<i32>} : memref<18x288xf32, #tpu.memory_space<vmem>>, vector<16x64xf32>,
    %c0_17 = arith.constant 0 : index
    %c0_18 = arith.constant 0 : index
    %c0_19 = arith.constant 0 : index
    %14 = vector.load %arg2[%c0_17, %c0_18, %c0_19] : memref<1x4x16xf32, #tpu.memory_space<vmem>>, vector<1x4x16xf32>
    %15 = vector.shape_cast %14 : vector<1x4x16xf32> to vector<4x16xf32>
    %16 = arith.truncf %15 : vector<4x16xf32> to vector<4x16xbf16>
    %c0_20 = arith.constant 0 : index
    %c0_21 = arith.constant 0 : index
    %17 = vector.load %arg9[%c0_20, %c0_21] : memref<16x256xbf16, #tpu.memory_space<vmem>>, vector<16x256xbf16>
    %cst_22 = arith.constant dense<0.000000e+00> : vector<4x256xf32>
    %18 = tpu.matmul %16, %17, %cst_22 {dimension_numbers = #tpu.dot_dimension_numbers<[1], [0], [0], [1], [0, 0, 1, 1], [], []>} : vector<4x16xbf16>, vector<16x256xbf16>, vector<4x256xf32> -> vector<4x256xf32>
    %c0_23 = arith.constant 0 : index
    %c0_24 = arith.constant 0 : index
    %19 = vector.load %arg10[%c0_23, %c0_24] : memref<1x256xf32, #tpu.memory_space<vmem>>, vector<1x256xf32>
    %20 = vector.broadcast %19 : vector<1x256xf32> to vector<4x256xf32>
    %21 = arith.addf %18, %20 : vector<4x256xf32>
    %22 = vector.extract_strided_slice %21 {offsets = [0, 0], sizes = [1, 64], strides = [1, 1]} : vector<4x256xf32> to vector<1x64xf32>
    %c1_25 = arith.constant 1 : index
    %c148 = arith.constant 148 : index
    %23 = vector.load %arg18[%c1_25, %c148] : memref<18x288xf32, #tpu.memory_space<vmem>>, vector<1x64xf32>
    tpu.vector_store %arg18[%c1_25, %c148], %22 {strides = array<i32>} : memref<18x288xf32, #tpu.memory_space<vmem>>, vector<1x64xf32>,
    %24 = vector.extract_strided_slice %21 {offsets = [0, 64], sizes = [1, 64], strides = [1, 1]} : vector<4x256xf32> to vector<1x64xf32>
    %c2 = arith.constant 2 : index
    %c148_26 = arith.constant 148 : index
    %25 = vector.load %arg18[%c2, %c148_26] : memref<18x288xf32, #tpu.memory_space<vmem>>, vector<1x64xf32>
    tpu.vector_store %arg18[%c2, %c148_26], %24 {strides = array<i32>} : memref<18x288xf32, #tpu.memory_space<vmem>>, vector<1x64xf32>,
    %26 = vector.extract_strided_slice %21 {offsets = [0, 128], sizes = [1, 64], strides = [1, 1]} : vector<4x256xf32> to vector<1x64xf32>
    %c3 = arith.constant 3 : index
    %c148_27 = arith.constant 148 : index
    %27 = vector.load %arg18[%c3, %c148_27] : memref<18x288xf32, #tpu.memory_space<vmem>>, vector<1x64xf32>
    tpu.vector_store %arg18[%c3, %c148_27], %26 {strides = array<i32>} : memref<18x288xf32, #tpu.memory_space<vmem>>, vector<1x64xf32>,
    %28 = vector.extract_strided_slice %21 {offsets = [0, 192], sizes = [1, 64], strides = [1, 1]} : vector<4x256xf32> to vector<1x64xf32>
    %c4_28 = arith.constant 4 : index
    %c148_29 = arith.constant 148 : index
    %29 = vector.load %arg18[%c4_28, %c148_29] : memref<18x288xf32, #tpu.memory_space<vmem>>, vector<1x64xf32>
    tpu.vector_store %arg18[%c4_28, %c148_29], %28 {strides = array<i32>} : memref<18x288xf32, #tpu.memory_space<vmem>>, vector<1x64xf32>,
    %30 = vector.extract_strided_slice %21 {offsets = [1, 0], sizes = [1, 64], strides = [1, 1]} : vector<4x256xf32> to vector<1x64xf32>
    %c5 = arith.constant 5 : index
    %c148_30 = arith.constant 148 : index
    %31 = vector.load %arg18[%c5, %c148_30] : memref<18x288xf32, #tpu.memory_space<vmem>>, vector<1x64xf32>
    tpu.vector_store %arg18[%c5, %c148_30], %30 {strides = array<i32>} : memref<18x288xf32, #tpu.memory_space<vmem>>, vector<1x64xf32>,
    %32 = vector.extract_strided_slice %21 {offsets = [1, 64], sizes = [1, 64], strides = [1, 1]} : vector<4x256xf32> to vector<1x64xf32>
    %c6 = arith.constant 6 : index
    %c148_31 = arith.constant 148 : index
    %33 = vector.load %arg18[%c6, %c148_31] : memref<18x288xf32, #tpu.memory_space<vmem>>, vector<1x64xf32>
    tpu.vector_store %arg18[%c6, %c148_31], %32 {strides = array<i32>} : memref<18x288xf32, #tpu.memory_space<vmem>>, vector<1x64xf32>,
    %34 = vector.extract_strided_slice %21 {offsets = [1, 128], sizes = [1, 64], strides = [1, 1]} : vector<4x256xf32> to vector<1x64xf32>
    %c7 = arith.constant 7 : index
    %c148_32 = arith.constant 148 : index
    %35 = vector.load %arg18[%c7, %c148_32] : memref<18x288xf32, #tpu.memory_space<vmem>>, vector<1x64xf32>
    tpu.vector_store %arg18[%c7, %c148_32], %34 {strides = array<i32>} : memref<18x288xf32, #tpu.memory_space<vmem>>, vector<1x64xf32>,
    %36 = vector.extract_strided_slice %21 {offsets = [1, 192], sizes = [1, 64], strides = [1, 1]} : vector<4x256xf32> to vector<1x64xf32>
    %c8 = arith.constant 8 : index
    %c148_33 = arith.constant 148 : index
    %37 = vector.load %arg18[%c8, %c148_33] : memref<18x288xf32, #tpu.memory_space<vmem>>, vector<1x64xf32>
    tpu.vector_store %arg18[%c8, %c148_33], %36 {strides = array<i32>} : memref<18x288xf32, #tpu.memory_space<vmem>>, vector<1x64xf32>,
    %38 = vector.extract_strided_slice %21 {offsets = [2, 0], sizes = [1, 64], strides = [1, 1]} : vector<4x256xf32> to vector<1x64xf32>
    %c9 = arith.constant 9 : index
    %c148_34 = arith.constant 148 : index
    %39 = vector.load %arg18[%c9, %c148_34] : memref<18x288xf32, #tpu.memory_space<vmem>>, vector<1x64xf32>
    tpu.vector_store %arg18[%c9, %c148_34], %38 {strides = array<i32>} : memref<18x288xf32, #tpu.memory_space<vmem>>, vector<1x64xf32>,
    %40 = vector.extract_strided_slice %21 {offsets = [2, 64], sizes = [1, 64], strides = [1, 1]} : vector<4x256xf32> to vector<1x64xf32>
    %c10 = arith.constant 10 : index
    %c148_35 = arith.constant 148 : index
    %41 = vector.load %arg18[%c10, %c148_35] : memref<18x288xf32, #tpu.memory_space<vmem>>, vector<1x64xf32>
    tpu.vector_store %arg18[%c10, %c148_35], %40 {strides = array<i32>} : memref<18x288xf32, #tpu.memory_space<vmem>>, vector<1x64xf32>,
    %42 = vector.extract_strided_slice %21 {offsets = [2, 128], sizes = [1, 64], strides = [1, 1]} : vector<4x256xf32> to vector<1x64xf32>
    %c11 = arith.constant 11 : index
    %c148_36 = arith.constant 148 : index
    %43 = vector.load %arg18[%c11, %c148_36] : memref<18x288xf32, #tpu.memory_space<vmem>>, vector<1x64xf32>
    tpu.vector_store %arg18[%c11, %c148_36], %42 {strides = array<i32>} : memref<18x288xf32, #tpu.memory_space<vmem>>, vector<1x64xf32>,
    %44 = vector.extract_strided_slice %21 {offsets = [2, 192], sizes = [1, 64], strides = [1, 1]} : vector<4x256xf32> to vector<1x64xf32>
    %c12 = arith.constant 12 : index
    %c148_37 = arith.constant 148 : index
    %45 = vector.load %arg18[%c12, %c148_37] : memref<18x288xf32, #tpu.memory_space<vmem>>, vector<1x64xf32>
    tpu.vector_store %arg18[%c12, %c148_37], %44 {strides = array<i32>} : memref<18x288xf32, #tpu.memory_space<vmem>>, vector<1x64xf32>,
    %46 = vector.extract_strided_slice %21 {offsets = [3, 0], sizes = [1, 64], strides = [1, 1]} : vector<4x256xf32> to vector<1x64xf32>
    %c13 = arith.constant 13 : index
    %c148_38 = arith.constant 148 : index
    %47 = vector.load %arg18[%c13, %c148_38] : memref<18x288xf32, #tpu.memory_space<vmem>>, vector<1x64xf32>
    tpu.vector_store %arg18[%c13, %c148_38], %46 {strides = array<i32>} : memref<18x288xf32, #tpu.memory_space<vmem>>, vector<1x64xf32>,
    %48 = vector.extract_strided_slice %21 {offsets = [3, 64], sizes = [1, 64], strides = [1, 1]} : vector<4x256xf32> to vector<1x64xf32>
    %c14 = arith.constant 14 : index
    %c148_39 = arith.constant 148 : index
    %49 = vector.load %arg18[%c14, %c148_39] : memref<18x288xf32, #tpu.memory_space<vmem>>, vector<1x64xf32>
    tpu.vector_store %arg18[%c14, %c148_39], %48 {strides = array<i32>} : memref<18x288xf32, #tpu.memory_space<vmem>>, vector<1x64xf32>,
    %50 = vector.extract_strided_slice %21 {offsets = [3, 128], sizes = [1, 64], strides = [1, 1]} : vector<4x256xf32> to vector<1x64xf32>
    %c15 = arith.constant 15 : index
    %c148_40 = arith.constant 148 : index
    %51 = vector.load %arg18[%c15, %c148_40] : memref<18x288xf32, #tpu.memory_space<vmem>>, vector<1x64xf32>
    tpu.vector_store %arg18[%c15, %c148_40], %50 {strides = array<i32>} : memref<18x288xf32, #tpu.memory_space<vmem>>, vector<1x64xf32>,
    %52 = vector.extract_strided_slice %21 {offsets = [3, 192], sizes = [1, 64], strides = [1, 1]} : vector<4x256xf32> to vector<1x64xf32>
    %c16 = arith.constant 16 : index
    %c148_41 = arith.constant 148 : index
    %53 = vector.load %arg18[%c16, %c148_41] : memref<18x288xf32, #tpu.memory_space<vmem>>, vector<1x64xf32>
    tpu.vector_store %arg18[%c16, %c148_41], %52 {strides = array<i32>} : memref<18x288xf32, #tpu.memory_space<vmem>>, vector<1x64xf32>,
    %c0_42 = arith.constant 0 : index
    %c0_43 = arith.constant 0 : index
    %54 = vector.load %arg5[%c0_42, %c0_43] : memref<16x8xf32, #tpu.memory_space<vmem>>, vector<16x8xf32>
    %c0_44 = arith.constant 0 : index
    %c0_45 = arith.constant 0 : index
    %c0_46 = arith.constant 0 : index
    %55 = vector.load %arg1[%c0_44, %c0_45, %c0_46] : memref<1x8x32xf32, #tpu.memory_space<vmem>>, vector<1x8x32xf32>
    %56 = vector.shape_cast %55 : vector<1x8x32xf32> to vector<8x32xf32>
    %cst_47 = arith.constant dense<0.000000e+00> : vector<16x32xf32>
    %57 = tpu.matmul %54, %56, %cst_47 {dimension_numbers = #tpu.dot_dimension_numbers<[1], [0], [0], [1], [0, 0, 1, 1], [], []>} : vector<16x8xf32>, vector<8x32xf32>, vector<16x32xf32> -> vector<16x32xf32>
    %c0_48 = arith.constant 0 : index
    %c0_49 = arith.constant 0 : index
    %58 = vector.load %arg6[%c0_48, %c0_49] : memref<32x64xf32, #tpu.memory_space<vmem>>, vector<32x64xf32>
    %cst_50 = arith.constant dense<0.000000e+00> : vector<16x64xf32>
    %59 = tpu.matmul %57, %58, %cst_50 {dimension_numbers = #tpu.dot_dimension_numbers<[1], [0], [0], [1], [0, 0, 1, 1], [], []>} : vector<16x32xf32>, vector<32x64xf32>, vector<16x64xf32> -> vector<16x64xf32>
    %c1_51 = arith.constant 1 : index
    %c220 = arith.constant 220 : index
    %60 = vector.load %arg18[%c1_51, %c220] : memref<18x288xf32, #tpu.memory_space<vmem>>, vector<16x64xf32>
    tpu.vector_store %arg18[%c1_51, %c220], %59 {strides = array<i32>} : memref<18x288xf32, #tpu.memory_space<vmem>>, vector<16x64xf32>,
    %c0_52 = arith.constant 0 : index
    %c0_53 = arith.constant 0 : index
    %61 = vector.load %arg18[%c0_52, %c0_53] : memref<18x288xf32, #tpu.memory_space<vmem>>, vector<16x288xf32>
    %62 = arith.truncf %61 : vector<16x288xf32> to vector<16x288xbf16>
    %c0_54 = arith.constant 0 : index
    %c0_55 = arith.constant 0 : index
    %c0_56 = arith.constant 0 : index
    %63 = vector.load %arg11[%c0_54, %c0_55, %c0_56] : memref<3x288x128xbf16, #tpu.memory_space<vmem>>, vector<1x288x128xbf16>
    %64 = vector.shape_cast %63 : vector<1x288x128xbf16> to vector<288x128xbf16>
    %cst_57 = arith.constant dense<0.000000e+00> : vector<16x128xf32>
    %65 = tpu.matmul %62, %64, %cst_57 {dimension_numbers = #tpu.dot_dimension_numbers<[1], [0], [0], [1], [0, 0, 1, 1], [], []>} : vector<16x288xbf16>, vector<288x128xbf16>, vector<16x128xf32> -> vector<16x128xf32>
    %c1_58 = arith.constant 1 : index
    %c0_59 = arith.constant 0 : index
    %66 = vector.load %arg18[%c1_58, %c0_59] : memref<18x288xf32, #tpu.memory_space<vmem>>, vector<16x288xf32>
    %67 = arith.truncf %66 : vector<16x288xf32> to vector<16x288xbf16>
    %c1_60 = arith.constant 1 : index
    %c0_61 = arith.constant 0 : index
    %c0_62 = arith.constant 0 : index
    %68 = vector.load %arg11[%c1_60, %c0_61, %c0_62] : memref<3x288x128xbf16, #tpu.memory_space<vmem>>, vector<1x288x128xbf16>
    %69 = vector.shape_cast %68 : vector<1x288x128xbf16> to vector<288x128xbf16>
    %cst_63 = arith.constant dense<0.000000e+00> : vector<16x128xf32>
    %70 = tpu.matmul %67, %69, %cst_63 {dimension_numbers = #tpu.dot_dimension_numbers<[1], [0], [0], [1], [0, 0, 1, 1], [], []>} : vector<16x288xbf16>, vector<288x128xbf16>, vector<16x128xf32> -> vector<16x128xf32>
    %71 = arith.addf %65, %70 : vector<16x128xf32>
    %c2_64 = arith.constant 2 : index
    %c0_65 = arith.constant 0 : index
    %72 = vector.load %arg18[%c2_64, %c0_65] : memref<18x288xf32, #tpu.memory_space<vmem>>, vector<16x288xf32>
    %73 = arith.truncf %72 : vector<16x288xf32> to vector<16x288xbf16>
    %c2_66 = arith.constant 2 : index
    %c0_67 = arith.constant 0 : index
    %c0_68 = arith.constant 0 : index
    %74 = vector.load %arg11[%c2_66, %c0_67, %c0_68] : memref<3x288x128xbf16, #tpu.memory_space<vmem>>, vector<1x288x128xbf16>
    %75 = vector.shape_cast %74 : vector<1x288x128xbf16> to vector<288x128xbf16>
    %cst_69 = arith.constant dense<0.000000e+00> : vector<16x128xf32>
    %76 = tpu.matmul %73, %75, %cst_69 {dimension_numbers = #tpu.dot_dimension_numbers<[1], [0], [0], [1], [0, 0, 1, 1], [], []>} : vector<16x288xbf16>, vector<288x128xbf16>, vector<16x128xf32> -> vector<16x128xf32>
    %77 = arith.addf %71, %76 : vector<16x128xf32>
    %c0_70 = arith.constant 0 : index
    %c0_71 = arith.constant 0 : index
    %78 = vector.load %arg12[%c0_70, %c0_71] : memref<1x128xf32, #tpu.memory_space<vmem>>, vector<1x128xf32>
    %79 = vector.broadcast %78 : vector<1x128xf32> to vector<16x128xf32>
    %80 = arith.mulf %77, %79 : vector<16x128xf32>
    %c0_72 = arith.constant 0 : index
    %c0_73 = arith.constant 0 : index
    %81 = vector.load %arg13[%c0_72, %c0_73] : memref<1x128xf32, #tpu.memory_space<vmem>>, vector<1x128xf32>
    %82 = vector.broadcast %81 : vector<1x128xf32> to vector<16x128xf32>
    %83 = arith.addf %80, %82 : vector<16x128xf32>
    %cst_74 = arith.constant 0.000000e+00 : f32
    %84 = vector.broadcast %cst_74 : f32 to vector<16x128xf32>
    %85 = arith.maximumf %83, %84 : vector<16x128xf32>
    %c1_75 = arith.constant 1 : index
    %c8_76 = arith.constant 8 : index
    %86 = vector.load %arg19[%c1_75, %c8_76] : memref<18x144xf32, #tpu.memory_space<vmem>>, vector<16x128xf32>
    tpu.vector_store %arg19[%c1_75, %c8_76], %85 {strides = array<i32>} : memref<18x144xf32, #tpu.memory_space<vmem>>, vector<16x128xf32>,
    %c0_77 = arith.constant 0 : index
    %c0_78 = arith.constant 0 : index
    %87 = vector.load %arg19[%c0_77, %c0_78] : memref<18x144xf32, #tpu.memory_space<vmem>>, vector<16x144xf32>
    %88 = arith.truncf %87 : vector<16x144xf32> to vector<16x144xbf16>
    %c0_79 = arith.constant 0 : index
    %c0_80 = arith.constant 0 : index
    %c0_81 = arith.constant 0 : index
    %89 = vector.load %arg14[%c0_79, %c0_80, %c0_81] : memref<3x144x128xbf16, #tpu.memory_space<vmem>>, vector<1x144x128xbf16>
    %90 = vector.shape_cast %89 : vector<1x144x128xbf16> to vector<144x128xbf16>
    %cst_82 = arith.constant dense<0.000000e+00> : vector<16x128xf32>
    %91 = tpu.matmul %88, %90, %cst_82 {dimension_numbers = #tpu.dot_dimension_numbers<[1], [0], [0], [1], [0, 0, 1, 1], [], []>} : vector<16x144xbf16>, vector<144x128xbf16>, vector<16x128xf32> -> vector<16x128xf32>
    %c1_83 = arith.constant 1 : index
    %c0_84 = arith.constant 0 : index
    %92 = vector.load %arg19[%c1_83, %c0_84] : memref<18x144xf32, #tpu.memory_space<vmem>>, vector<16x144xf32>
    %93 = arith.truncf %92 : vector<16x144xf32> to vector<16x144xbf16>
    %c1_85 = arith.constant 1 : index
    %c0_86 = arith.constant 0 : index
    %c0_87 = arith.constant 0 : index
    %94 = vector.load %arg14[%c1_85, %c0_86, %c0_87] : memref<3x144x128xbf16, #tpu.memory_space<vmem>>, vector<1x144x128xbf16>
    %95 = vector.shape_cast %94 : vector<1x144x128xbf16> to vector<144x128xbf16>
    %cst_88 = arith.constant dense<0.000000e+00> : vector<16x128xf32>
    %96 = tpu.matmul %93, %95, %cst_88 {dimension_numbers = #tpu.dot_dimension_numbers<[1], [0], [0], [1], [0, 0, 1, 1], [], []>} : vector<16x144xbf16>, vector<144x128xbf16>, vector<16x128xf32> -> vector<16x128xf32>
    %97 = arith.addf %91, %96 : vector<16x128xf32>
    %c2_89 = arith.constant 2 : index
    %c0_90 = arith.constant 0 : index
    %98 = vector.load %arg19[%c2_89, %c0_90] : memref<18x144xf32, #tpu.memory_space<vmem>>, vector<16x144xf32>
    %99 = arith.truncf %98 : vector<16x144xf32> to vector<16x144xbf16>
    %c2_91 = arith.constant 2 : index
    %c0_92 = arith.constant 0 : index
    %c0_93 = arith.constant 0 : index
    %100 = vector.load %arg14[%c2_91, %c0_92, %c0_93] : memref<3x144x128xbf16, #tpu.memory_space<vmem>>, vector<1x144x128xbf16>
    %101 = vector.shape_cast %100 : vector<1x144x128xbf16> to vector<144x128xbf16>
    %cst_94 = arith.constant dense<0.000000e+00> : vector<16x128xf32>
    %102 = tpu.matmul %99, %101, %cst_94 {dimension_numbers = #tpu.dot_dimension_numbers<[1], [0], [0], [1], [0, 0, 1, 1], [], []>} : vector<16x144xbf16>, vector<144x128xbf16>, vector<16x128xf32> -> vector<16x128xf32>
    %103 = arith.addf %97, %102 : vector<16x128xf32>
    %c0_95 = arith.constant 0 : index
    %c0_96 = arith.constant 0 : index
    %104 = vector.load %arg15[%c0_95, %c0_96] : memref<1x128xf32, #tpu.memory_space<vmem>>, vector<1x128xf32>
    %105 = vector.broadcast %104 : vector<1x128xf32> to vector<16x128xf32>
    %106 = arith.mulf %103, %105 : vector<16x128xf32>
    %c0_97 = arith.constant 0 : index
    %c0_98 = arith.constant 0 : index
    %107 = vector.load %arg16[%c0_97, %c0_98] : memref<1x128xf32, #tpu.memory_space<vmem>>, vector<1x128xf32>
    %108 = vector.broadcast %107 : vector<1x128xf32> to vector<16x128xf32>
    %109 = arith.addf %106, %108 : vector<16x128xf32>
    %cst_99 = arith.constant 0.000000e+00 : f32
    %110 = vector.broadcast %cst_99 : f32 to vector<16x128xf32>
    %111 = arith.maximumf %109, %110 : vector<16x128xf32>
    %c0_100 = arith.constant 0 : index
    %c0_101 = arith.constant 0 : index
    %c0_102 = arith.constant 0 : index
    %112 = vector.load %arg17[%c0_100, %c0_101, %c0_102] : memref<1x16x128xf32, #tpu.memory_space<vmem>>, vector<1x16x128xf32>
    %113 = vector.shape_cast %112 : vector<1x16x128xf32> to vector<16x128xf32>
    %114 = vector.shape_cast %111 : vector<16x128xf32> to vector<1x16x128xf32>
    tpu.vector_store %arg17[%c0_100, %c0_101, %c0_102], %114 {strides = array<i32>} : memref<1x16x128xf32, #tpu.memory_space<vmem>>, vector<1x16x128xf32>,
    return
  }
  func.func @transform_0(%arg0: i32) -> (i32, i32, i32) {
    %c0_i32 = arith.constant 0 : i32
    %c0_i32_0 = arith.constant 0 : i32
    %c0_i32_1 = arith.constant 0 : i32
    return %arg0, %c0_i32, %c0_i32_0 : i32, i32, i32
  }
  func.func @transform_1(%arg0: i32) -> (i32, i32, i32) {
    %c0_i32 = arith.constant 0 : i32
    %c0_i32_0 = arith.constant 0 : i32
    %c0_i32_1 = arith.constant 0 : i32
    return %arg0, %c0_i32, %c0_i32_0 : i32, i32, i32
  }
  func.func @transform_2(%arg0: i32) -> (i32, i32, i32) {
    %c0_i32 = arith.constant 0 : i32
    %c0_i32_0 = arith.constant 0 : i32
    %c0_i32_1 = arith.constant 0 : i32
    return %arg0, %c0_i32, %c0_i32_0 : i32, i32, i32
  }
  func.func @transform_3(%arg0: i32) -> (i32, i32, i32) {
    %c0_i32 = arith.constant 0 : i32
    %c0_i32_0 = arith.constant 0 : i32
    %c0_i32_1 = arith.constant 0 : i32
    return %arg0, %c0_i32, %c0_i32_0 : i32, i32, i32
  }
  func.func @transform_4(%arg0: i32) -> (i32, i32) {
    %c0_i32 = arith.constant 0 : i32
    %c0_i32_0 = arith.constant 0 : i32
    %c0_i32_1 = arith.constant 0 : i32
    return %c0_i32, %c0_i32_0 : i32, i32
  }
  func.func @transform_5(%arg0: i32) -> (i32, i32) {
    %c0_i32 = arith.constant 0 : i32
    %c0_i32_0 = arith.constant 0 : i32
    %c0_i32_1 = arith.constant 0 : i32
    return %c0_i32, %c0_i32_0 : i32, i32
  }
  func.func @transform_6(%arg0: i32) -> (i32, i32) {
    %c0_i32 = arith.constant 0 : i32
    %c0_i32_0 = arith.constant 0 : i32
    %c0_i32_1 = arith.constant 0 : i32
    return %c0_i32, %c0_i32_0 : i32, i32
  }
  func.func @transform_7(%arg0: i32) -> (i32, i32) {
    %c0_i32 = arith.constant 0 : i32
    %c0_i32_0 = arith.constant 0 : i32
    %c0_i32_1 = arith.constant 0 : i32
    return %c0_i32, %c0_i32_0 : i32, i32
  }
  func.func @transform_8(%arg0: i32) -> (i32, i32) {
    %c0_i32 = arith.constant 0 : i32
    %c0_i32_0 = arith.constant 0 : i32
    %c0_i32_1 = arith.constant 0 : i32
    return %c0_i32, %c0_i32_0 : i32, i32
  }
  func.func @transform_9(%arg0: i32) -> (i32, i32) {
    %c0_i32 = arith.constant 0 : i32
    %c0_i32_0 = arith.constant 0 : i32
    %c0_i32_1 = arith.constant 0 : i32
    return %c0_i32, %c0_i32_0 : i32, i32
  }
  func.func @transform_10(%arg0: i32) -> (i32, i32, i32) {
    %c0_i32 = arith.constant 0 : i32
    %c0_i32_0 = arith.constant 0 : i32
    %c0_i32_1 = arith.constant 0 : i32
    %c0_i32_2 = arith.constant 0 : i32
    return %c0_i32, %c0_i32_0, %c0_i32_1 : i32, i32, i32
  }
  func.func @transform_11(%arg0: i32) -> (i32, i32) {
    %c0_i32 = arith.constant 0 : i32
    %c0_i32_0 = arith.constant 0 : i32
    %c0_i32_1 = arith.constant 0 : i32
    return %c0_i32, %c0_i32_0 : i32, i32
  }
  func.func @transform_12(%arg0: i32) -> (i32, i32) {
    %c0_i32 = arith.constant 0 : i32
    %c0_i32_0 = arith.constant 0 : i32
    %c0_i32_1 = arith.constant 0 : i32
    return %c0_i32, %c0_i32_0 : i32, i32
  }
  func.func @transform_13(%arg0: i32) -> (i32, i32, i32) {
    %c0_i32 = arith.constant 0 : i32
    %c0_i32_0 = arith.constant 0 : i32
    %c0_i32_1 = arith.constant 0 : i32
    %c0_i32_2 = arith.constant 0 : i32
    return %c0_i32, %c0_i32_0, %c0_i32_1 : i32, i32, i32
  }
  func.func @transform_14(%arg0: i32) -> (i32, i32) {
    %c0_i32 = arith.constant 0 : i32
    %c0_i32_0 = arith.constant 0 : i32
    %c0_i32_1 = arith.constant 0 : i32
    return %c0_i32, %c0_i32_0 : i32, i32
  }
  func.func @transform_15(%arg0: i32) -> (i32, i32) {
    %c0_i32 = arith.constant 0 : i32
    %c0_i32_0 = arith.constant 0 : i32
    %c0_i32_1 = arith.constant 0 : i32
    return %c0_i32, %c0_i32_0 : i32, i32
  }
  func.func @transform_16(%arg0: i32) -> (i32, i32, i32) {
    %c0_i32 = arith.constant 0 : i32
    %c0_i32_0 = arith.constant 0 : i32
    %c0_i32_1 = arith.constant 0 : i32
    return %arg0, %c0_i32, %c0_i32_0 : i32, i32, i32
  }
}

</mosaic_0001>

<bundles_post_ra>
// kernel: tpu_custom_call.1
= control target key start
LH: loop header
LB: loop body
LE: loop exit
PB: predicated region body
PF: predicated region fallthrough
CT: control target
= control target key end

     0   :  { %s4165_s0 = inlined_call_operand.hbm [shape: f32[2,8,32], index: 0, kind: input, shape index: {}]   ;;  %s4166_s1 = inlined_call_operand.hbm [shape: f32[2,4,16], index: 1, kind: input, shape index: {}]   ;;  %s4167_s2 = inlined_call_operand.hbm [shape: f32[2,8,32], index: 2, kind: input, shape index: {}]   ;;  %s4168_s3 = inlined_call_operand.vmem [shape: f32[2,16,64], index: 3, kind: input, shape index: {}]   ;;  %s4169_s4 = inlined_call_operand.vmem [shape: f32[16,8], index: 4, kind: input, shape index: {}]   ;;  %s4170_s5 = inlined_call_operand.vmem [shape: f32[32,64], index: 5, kind: input, shape index: {}]   ;;  %s4171_s6 = inlined_call_operand.vmem [shape: f32[16,8], index: 6, kind: input, shape index: {}]   ;;  %s4172_s7 = inlined_call_operand.hbm [shape: f32[32,64], index: 7, kind: input, shape index: {}]   ;;  %s4173_s8 = inlined_call_operand.hbm [shape: bf16[16,256], index: 8, kind: input, shape index: {}]   ;;  %s4174_s9 = inlined_call_operand.vmem [shape: f32[1,256], index: 9, kind: input, shape index: {}]   ;;  %s4175_s10 = inlined_call_operand.hbm [shape: bf16[3,288,128], index: 10, kind: input, shape index: {}]   ;;  %s4176_s11 = inlined_call_operand.vmem [shape: f32[1,128], index: 11, kind: input, shape index: {}]   ;;  %s4177_s12 = inlined_call_operand.vmem [shape: f32[1,128], index: 12, kind: input, shape index: {}]   ;;  %s4178_s13 = inlined_call_operand.hbm [shape: bf16[3,144,128], index: 13, kind: input, shape index: {}]   ;;  %s4179_s14 = inlined_call_operand.vmem [shape: f32[1,128], index: 14, kind: input, shape index: {}]   ;;  %s4180_s15 = inlined_call_operand.vmem [shape: f32[1,128], index: 15, kind: input, shape index: {}]   ;;  %s4181_s16 = inlined_call_operand.hbm [shape: f32[2,16,128], index: 16, kind: output, shape index: {}]  }
   0x1   :  { %4206 = sst [smem:[#allocation28_spill]] %s4165_s0 }
   0x2   :  { %4207 = sst [smem:[#allocation29_spill]] %s4166_s1 }
   0x3   :  { %4208 = sst [smem:[#allocation30_spill]] %s4169_s4 }
   0x4   :  { %4209 = sst [smem:[#allocation31_spill]] %s4172_s7 }
   0x5   :  { %4210 = sst [smem:[#allocation32_spill]] %s4175_s10 }
   0x6   :  { %4211 = sst [smem:[#allocation33_spill]] %s4176_s11 }
   0x7   :  { %4212 = sst [smem:[#allocation34_spill]] %s4177_s12 }
   0x8   :  { %4213 = sst [smem:[#allocation35_spill]] %s4179_s14 }
   0x9   :  { %4214 = sst [smem:[#allocation36_spill]] %s4180_s15 }
   0xa   :  { %4215 = sst [smem:[#allocation37_spill]] %s4181_s16 }
   0xb   :  { %21 = vsyncpa [#allocation5], 0 }
   0xc   :  { %23 = vsyncpa [#allocation5 + $0x1], 0 }
   0xd   :  { %24 = vsyncpa [#allocation8], 0 }
   0xe   :  { %26 = vsyncpa [#allocation8 + $0x1], 0 }
   0xf   :  { %27 = vsyncpa [#allocation11], 0 }
  0x10   :  { %28 = vsyncpa [#allocation14], 0 }
  0x11   :  { %29 = vsyncpa [#allocation6], 0 }
  0x12   :  { %31 = vsyncpa [#allocation6 + $0x1], 0  ;;  %s3601_s21 = smov 0   ;;  %s3603_s22 = smov 0  }
  0x13   :  { %s3605_s23 = smov 0   ;;  %s3607_s24 = smov 0  }
  0x14 LB: > { %4216 = sst [smem:[#allocation22_spill]] %s3480_s21  ;;  %s3494_s25 = smov [#allocation10]   ;;  %s3492_s24 = sphi %s3607_s24, %s4262_s24   ;;  %s3488_s23 = sphi %s3605_s23, %s4264_s23   ;;  %s3484_s22 = sphi %s3603_s22, %s4266_s22   ;;  %s3480_s21 = sphi %s3601_s21, %s4265_s21  }
  0x15   : > { %4217 = sst [smem:[#allocation23_spill]] %s3488_s23  ;;  %s445_s26 = sshll.u32 %s3494_s25, 4  ;;  %s3627_s26 = int_to_ptr.vmem [resolvable:$true] %s445_s26 }
  0x16   : > { %s3622_s27 = sadd.s32 4294967295, %s3492_s24   ;;  %p2702_p0 = scmp.ge.s32.totalorder %s3492_s24, 1 }
  0x17   : > { %p4193_p1 = scmp.eq.s32.totalorder %s3622_s27, 0  ;;  %p424_p2 = scmp.lt.s32.totalorder %s3492_s24, 3 }
  0x18   : > { %s3495_s29 = smov [#allocation13]   ;;  %s4220_s7 = sld [smem:[#allocation31_spill]] }
  0x19   : > { %p3629_p3 = pnand %p2702_p0, %p424_p2  ;;  %s474_s30 = sshll.u32 %s3495_s29, 4  ;;  %s3642_s30 = int_to_ptr.vmem [resolvable:$true] %s474_s30 }
  0x1b   : > { %s4218_s28 = scalar_select %p3629_p3, 1, 0 }
  0x1c   : > { %p3041_p5 = pneg %p3629_p3 }
  0x1e   : > { %p3638_p6 = pnand %p3041_p5, %p4193_p1  ;;  %s3212_s19 = scalar_lea.hbm %s4220_s7, 512 }
  0x1f   : > { %p3213_p7 = scmp.ne.s32.totalorder %s4220_s7, %s3212_s19  ;;  %p3219_p11 = scmp.lt.u32.totalorder %s3212_s19, %s4220_s7 }
  0x20   : > { %s4219_s0 = scalar_select %p3638_p6, 1, 0 }
  0x21   : > { %p3652_p8 = pneg %p3638_p6 }
  0x23   : > { %s4221_s16 = scalar_select %p3652_p8, 1, 0 }
  0x24   : > { %p3215_p9 = pnand %p3652_p8, %p3213_p7 }
  0x26   : > { %p3216_p10 = pneg %p3215_p9 }
  0x28   : > { %p3221_p12 = pnand %p3219_p11, %p3216_p10 }
  0x2a   : > { %3224 = shalt.err (!%p3221_p12)
}
  0x2b   : > { %s3225_s17 = scalar_lea.vmem %s3627_s26, 512  ;;  %p3233_p5 = scmp.lt.s32.totalorder %s3627_s26, %s3627_s26 }
  0x2c   : > { %p3226_p13 = scmp.ne.s32.totalorder %s3627_s26, %s3225_s17  ;;  %p3234_p4 = scmp.lt.s32.totalorder %s3225_s17, %s3225_s17 }
  0x2e   : > { %p3228_p0 = pnand %p3226_p13, %p3652_p8  ;;  %p3235_p7 = por %p3234_p4, %p3233_p5 }
  0x30   : > { %p3229_p2 = pneg %p3228_p0 }
  0x32   : > { %p3236_p9 = pnand %p3235_p7, %p3229_p2 }
  0x34   : > { %3239 = shalt.err (!%p3236_p9)
}
  0x35   : > { %s4188_s18 = smov 128   ;;  %s4189_s15 = smov 8  }
  0x36   : > { %3044 = dma.hbm_to_vmem [thread:$0]  (!%p3638_p6), %s4220_s7, 512, %s3627_s26, [#allocation11], %s4188_s18, %s4188_s18, %s4189_s15  }
  0x37   : > { %s4222_s10 = sld [smem:[#allocation32_spill]] }
  0x3d   : > { %s3240_s17 = scalar_lea.hbm %s4222_s10, 6912 }
  0x3e   : > { %p3241_p4 = scmp.ne.s32.totalorder %s4222_s10, %s3240_s17  ;;  %p3247_p12 = scmp.lt.u32.totalorder %s3240_s17, %s4222_s10 }
  0x40   : > { %p3243_p10 = pnand %p3241_p4, %p3652_p8 }
  0x42   : > { %p3244_p11 = pneg %p3243_p10 }
  0x44   : > { %p3249_p13 = pnand %p3247_p12, %p3244_p11 }
  0x46   : > { %3252 = shalt.err (!%p3249_p13)
}
  0x47   : > { %s3253_s26 = scalar_lea.vmem %s3642_s30, 6912  ;;  %p3261_p7 = scmp.lt.s32.totalorder %s3642_s30, %s3642_s30 }
  0x48   : > { %p3254_p0 = scmp.ne.s32.totalorder %s3642_s30, %s3253_s26  ;;  %p3262_p9 = scmp.lt.s32.totalorder %s3253_s26, %s3253_s26 }
  0x4a   : > { %p3256_p2 = pnand %p3254_p0, %p3652_p8  ;;  %p3263_p4 = por %p3262_p9, %p3261_p7 }
  0x4c   : > { %p3257_p5 = pneg %p3256_p2 }
  0x4e   : > { %p3264_p10 = pnand %p3263_p4, %p3257_p5 }
  0x50   : > { %3267 = shalt.err (!%p3264_p10)
}
  0x51   : > { %s4186_s12 = smov 64   ;;  %s4187_s4 = smov 4  }
  0x52   : > { %3050 = dma.hbm_to_vmem [thread:$0]  (!%p3638_p6), %s4222_s10, 6912, %s3642_s30, [#allocation14], %s4186_s12, %s4186_s12, %s4187_s4  }
  0x53   : > { %s2701_s19 = sadd.s32 4294967294, %s3492_s24   ;;  %s3704_s20 = sadd.s32 1, %s3492_s24  }
  0x54   : > { %4223 = sst [smem:[#allocation24_spill]] %s3704_s20  ;;  %s41_s25 = ssub.s32 %s3492_s24, %s3704_s20 }
  0x55   : > { %s44_s29 = sadd.s32 1, %s3488_s23  ;;  %p42_p11 = scmp.eq.s32.totalorder %s41_s25, 0 }
  0x56   : > { %p51_p12 = scmp.ne.s32.totalorder %s3488_s23, %s3484_s22  ;;  %p52_p13 = scmp.eq.s32.totalorder %s3492_s24, 0 }
  0x57   : > { %p57_p0 = scmp.ne.s32.totalorder %s3484_s22, %s3480_s21  ;;  %p411_p7 = scmp.eq.s32.totalorder %s3622_s27, 1 }
  0x58   : > { %s3715_s17 = scalar_select %p42_p11, %s3488_s23, %s44_s29  }
  0x59   : > { %p53_p2 = por %p52_p13, %p51_p12  ;;  %p3719_p5 = por %p4193_p1, %p57_p0 }
  0x5a   : > { %4224 = sst [smem:[#allocation25_spill]] %s3715_s17  ;;  %p417_p9 = scmp.eq.s32.totalorder %s2701_s19, 1 }
  0x5b   : > { %s4225_s26 = scalar_select %p3719_p5, 1, 0 }
  0x5c   : > { %p3072_p4 = scmp.lt.s32.totalorder %s3492_s24, 2  ;;  %s3726_s30 = sand.u32 1, %s3488_s23  }
  0x5d   : > { %p3728_p10 = por %p411_p7, %p51_p12  ;;  %p3732_p3 = por %p417_p9, %p57_p0 }
  0x5e   : > { %p3736_p11 = pnand %p3072_p4, %p53_p2  ;;  %s531_s29 = sand.u32 1, %s3492_s24  }
  0x5f   : > { %s4226_s11 = scalar_select %p3728_p10, 1, 0 }
  0x60   : > { %s4228_s14 = scalar_select %p3732_p3, 1, 0 }
  0x61   : > { %4227 = sst [smem:[#allocation26_spill]] %s4226_s11  ;;  %s2710_s12 = sshll.u32 %s3726_s30, 2 }
  0x62   : > { %4229 = sst [smem:[#allocation27_spill]] %s4228_s14  ;;  %s2711_s19 = sshll.u32 %s3492_s24, 6 }
  0x63   : > { %s4230_s25 = scalar_select %p3736_p11, 1, 0 }
  0x64   : > { %s535_s4 = scalar_lea.vmem [#allocation7], %s2710_s12  ;;  %s4231_s1 = sld [smem:[#allocation29_spill]] }
  0x65   : > { %s542_s18 = sshll.u32 %s535_s4, 4  ;;  %s3750_s17 = scalar_lea.sflag [#allocation8], %s531_s29  ;;  %s3748_s18 = int_to_ptr.vmem [resolvable:$true] %s542_s18 }
  0x66   : > { %p3756_p13 = pneg %p3736_p11 }
  0x6a   : > { %s3746_s10 = scalar_lea.hbm %s4231_s1, %s2711_s19  ;;  %s3273_s12 = scalar_lea.hbm %s4231_s1, 128 }
  0x6b   : > { %s3268_s23 = scalar_lea.hbm %s3746_s10, 64  ;;  %p3274_p7 = scmp.lt.u32.totalorder %s3746_s10, %s4231_s1 }
  0x6c   : > { %p3269_p12 = scmp.ne.s32.totalorder %s3746_s10, %s3268_s23  ;;  %p3275_p9 = scmp.lt.u32.totalorder %s3273_s12, %s3268_s23 }
  0x6d   : > { %p3277_p1 = scmp.lt.u32.totalorder %s3268_s23, %s3746_s10 }
  0x6e   : > { %p3271_p0 = pnand %p3756_p13, %p3269_p12  ;;  %p3276_p4 = por %p3275_p9, %p3274_p7 }
  0x70   : > { %p3272_p2 = pneg %p3271_p0  ;;  %p3278_p3 = por %p3277_p1, %p3276_p4 }
  0x72   : > { %p3279_p10 = pnand %p3278_p3, %p3272_p2 }
  0x74   : > { %3282 = shalt.err (!%p3279_p10)
}
  0x75   : > { %s3283_s29 = scalar_lea.vmem %s3748_s18, 64  ;;  %s3500_s7 = smov [#allocation7]  }
  0x76   : > { %p3284_p12 = scmp.ne.s32.totalorder %s3748_s18, %s3283_s29  ;;  %s3288_s15 = sshll.u32 %s3500_s7, 4  ;;  %s3289_s15 = int_to_ptr.vmem [resolvable:$false] %s3288_s15 }
  0x77   : > { %s3290_s4 = scalar_lea.vmem %s3289_s15, 128  ;;  %p3291_p6 = scmp.lt.s32.totalorder %s3748_s18, %s3289_s15 }
  0x78   : > { %p3286_p0 = pnand %p3284_p12, %p3756_p13  ;;  %p3292_p8 = scmp.lt.s32.totalorder %s3290_s4, %s3283_s29 }
  0x7a   : > { %p3287_p5 = pneg %p3286_p0  ;;  %p3293_p7 = por %p3292_p8, %p3291_p6 }
  0x7c   : > { %p3294_p9 = pnand %p3293_p7, %p3287_p5 }
  0x7e   : > { %3297 = shalt.err (!%p3294_p9)
}
  0x7f   : > { %3060 = dma.hbm_to_vmem [thread:$0]  (!%p3736_p11), %s3746_s10, 64, %s3748_s18, %s3750_s17  }
  0x80   : > { %s3501_s23 = smov [#allocation12]   ;;  %s3502_s19 = smov [#allocation15]  }
  0x81   : > { %s458_s12 = sshll.u32 %s3501_s23, 4  ;;  %s493_s1 = sshll.u32 %s3502_s19, 4  ;;  %s459_s12 = int_to_ptr.vmem [resolvable:$true] %s458_s12  ;;  %s3780_s1 = int_to_ptr.vmem [resolvable:$true] %s493_s1 }
  0x82   : > { %s3298_s29 = scalar_lea.hbm %s4173_s8, 256  ;;  %p4233_p3 = scmp.ne.s32.totalorder %s4221_s16, 0 }
  0x83   : > { %p3299_p1 = scmp.ne.s32.totalorder %s4173_s8, %s3298_s29  ;;  %p3305_p5 = scmp.lt.u32.totalorder %s3298_s29, %s4173_s8 }
  0x85   : > { %p3301_p6 = pnand %p3299_p1, %p4233_p3 }
  0x87   : > { %p3302_p8 = pneg %p3301_p6 }
  0x89   : > { %p3307_p10 = pnand %p3305_p5, %p3302_p8 }
  0x8b   : > { %3310 = shalt.err (!%p3307_p10)
}
  0x8c   : > { %s3311_s18 = scalar_lea.vmem %s459_s12, 256  ;;  %p3319_p0 = scmp.lt.s32.totalorder %s459_s12, %s459_s12 }
  0x8d   : > { %p3312_p2 = scmp.ne.s32.totalorder %s459_s12, %s3311_s18  ;;  %p3320_p7 = scmp.lt.s32.totalorder %s3311_s18, %s3311_s18 }
  0x8f   : > { %p3314_p4 = pnand %p3312_p2, %p4233_p3  ;;  %p3321_p9 = por %p3320_p7, %p3319_p0 }
  0x91   : > { %p3315_p12 = pneg %p3314_p4 }
  0x93   : > { %p3322_p11 = pnand %p3321_p9, %p3315_p12 }
  0x95   : > { %3325 = shalt.err (!%p3322_p11)
}
  0x96   : > { %p4234_p1 = scmp.ne.s32.totalorder %s4219_s0, 0  ;;  %s4235_s14 = smov 8  }
  0x97   : > { %s4236_s23 = smov 128   ;;  %s3326_s29 = scalar_lea.hbm %s4178_s13, 3456 }
  0x98   : > { %3047 = dma.hbm_to_vmem [thread:$0]  (!%p4234_p1), %s4173_s8, 256, %s459_s12, [#allocation11], %s4236_s23, %s4236_s23, %s4235_s14  }
  0x99   : > { %p3327_p6 = scmp.ne.s32.totalorder %s4178_s13, %s3326_s29  ;;  %p3333_p5 = scmp.lt.u32.totalorder %s3326_s29, %s4178_s13 }
  0x9b   : > { %p3329_p11 = pnand %p3327_p6, %p4233_p3 }
  0x9d   : > { %p3330_p8 = pneg %p3329_p11 }
  0x9f   : > { %p3335_p10 = pnand %p3333_p5, %p3330_p8 }
  0xa1   : > { %3338 = shalt.err (!%p3335_p10)
}
  0xa2   : > { %s3339_s12 = scalar_lea.vmem %s3780_s1, 3456  ;;  %p3347_p0 = scmp.lt.s32.totalorder %s3780_s1, %s3780_s1 }
  0xa3   : > { %p3340_p2 = scmp.ne.s32.totalorder %s3780_s1, %s3339_s12  ;;  %p3348_p7 = scmp.lt.s32.totalorder %s3339_s12, %s3339_s12 }
  0xa5   : > { %p3342_p4 = pnand %p3340_p2, %p4233_p3  ;;  %p3349_p9 = por %p3348_p7, %p3347_p0 }
  0xa7   : > { %p3343_p12 = pneg %p3342_p4 }
  0xa9   : > { %p3350_p6 = pnand %p3349_p9, %p3343_p12 }
  0xab   : > { %3353 = shalt.err (!%p3350_p6)
}
  0xac   : > { %s4237_s11 = smov 4   ;;  %s4238_s14 = smov 64  }
  0xad   : > { %3053 = dma.hbm_to_vmem [thread:$0]  (!%p4234_p1), %s4178_s13, 3456, %s3780_s1, [#allocation14], %s4238_s14, %s4238_s14, %s4237_s11  }
  0xae   : > { %s2708_s16 = sshll.u32 %s3726_s30, 3  ;;  %s2709_s19 = sshll.u32 %s3492_s24, 7 }
  0xaf   : > { %s4239_s0 = sld [smem:[#allocation28_spill]]  ;;  %s517_s4 = scalar_lea.vmem [#allocation4], %s2708_s16 }
  0xb0   : > { %s524_s10 = sshll.u32 %s517_s4, 4  ;;  %s514_s18 = scalar_lea.sflag [#allocation5], %s3726_s30  ;;  %s525_s10 = int_to_ptr.vmem [resolvable:$true] %s524_s10 }
  0xb5   : > { %s3836_s29 = scalar_lea.hbm %s4239_s0, %s2709_s19  ;;  %s3359_s14 = scalar_lea.hbm %s4239_s0, 256 }
  0xb6   : > { %s3354_s12 = scalar_lea.hbm %s3836_s29, 128  ;;  %p3360_p8 = scmp.lt.u32.totalorder %s3836_s29, %s4239_s0 }
  0xb7   : > { %p3355_p3 = scmp.ne.s32.totalorder %s3836_s29, %s3354_s12  ;;  %p3361_p5 = scmp.lt.u32.totalorder %s3359_s14, %s3354_s12 }
  0xb8   : > { %p3363_p2 = scmp.lt.u32.totalorder %s3354_s12, %s3836_s29 }
  0xb9   : > { %p3357_p1 = pnand %p3355_p3, %p3756_p13  ;;  %p3362_p10 = por %p3361_p5, %p3360_p8 }
  0xbb   : > { %p3358_p11 = pneg %p3357_p1  ;;  %p3364_p4 = por %p3363_p2, %p3362_p10 }
  0xbd   : > { %p3365_p12 = pnand %p3364_p4, %p3358_p11 }
  0xbf   : > { %3368 = shalt.err (!%p3365_p12)
}
  0xc0   : > { %s3369_s7 = scalar_lea.vmem %s525_s10, 128  ;;  %s3503_s15 = smov [#allocation4]  }
  0xc1   : > { %p3370_p0 = scmp.ne.s32.totalorder %s525_s10, %s3369_s7  ;;  %s3374_s4 = sshll.u32 %s3503_s15, 4  ;;  %s3375_s4 = int_to_ptr.vmem [resolvable:$false] %s3374_s4 }
  0xc2   : > { %s3376_s1 = scalar_lea.vmem %s3375_s4, 256  ;;  %p3377_p6 = scmp.lt.s32.totalorder %s525_s10, %s3375_s4 }
  0xc3   : > { %p3372_p7 = pnand %p3370_p0, %p3756_p13  ;;  %p3378_p3 = scmp.lt.s32.totalorder %s3376_s1, %s3369_s7 }
  0xc5   : > { %p3373_p9 = pneg %p3372_p7  ;;  %p3379_p1 = por %p3378_p3, %p3377_p6 }
  0xc7   : > { %p3380_p5 = pnand %p3379_p1, %p3373_p9 }
  0xc9   : > { %3383 = shalt.err (!%p3380_p5)
}
  0xca   : > { %p4240_p8 = scmp.ne.s32.totalorder %s4230_s25, 0  ;;  %s3863_s14 = scalar_lea.hbm %s4167_s2, %s2709_s19 }
  0xcb   : > { %s553_s23 = scalar_lea.vmem [#allocation9], %s2708_s16  ;;  %s3384_s7 = scalar_lea.hbm %s3863_s14, 128 }
  0xcc   : > { %3057 = dma.hbm_to_vmem [thread:$0]  (!%p4240_p8), %s3836_s29, 128, %s525_s10, %s514_s18  }
  0xcd   : > { %s560_s21 = sshll.u32 %s553_s23, 4  ;;  %p3385_p11 = scmp.ne.s32.totalorder %s3863_s14, %s3384_s7  ;;  %s561_s21 = int_to_ptr.vmem [resolvable:$true] %s560_s21 }
  0xce   : > { %s3389_s18 = scalar_lea.hbm %s4167_s2, 256  ;;  %p3390_p4 = scmp.lt.u32.totalorder %s3863_s14, %s4167_s2 }
  0xcf   : > { %p3387_p10 = pnand %p3385_p11, %p3756_p13  ;;  %p3391_p12 = scmp.lt.u32.totalorder %s3389_s18, %s3384_s7 }
  0xd0   : > { %p3393_p7 = scmp.lt.u32.totalorder %s3384_s7, %s3863_s14 }
  0xd1   : > { %p3388_p2 = pneg %p3387_p10  ;;  %p3392_p0 = por %p3391_p12, %p3390_p4 }
  0xd3   : > { %p3394_p9 = por %p3393_p7, %p3392_p0 }
  0xd5   : > { %p3395_p6 = pnand %p3394_p9, %p3388_p2 }
  0xd7   : > { %3398 = shalt.err (!%p3395_p6)
}
  0xd8   : > { %s3399_s30 = scalar_lea.vmem %s561_s21, 128  ;;  %s3504_s16 = smov [#allocation9]  }
  0xd9   : > { %p3400_p3 = scmp.ne.s32.totalorder %s561_s21, %s3399_s30  ;;  %s3404_s4 = sshll.u32 %s3504_s16, 4  ;;  %s3405_s4 = int_to_ptr.vmem [resolvable:$false] %s3404_s4 }
  0xda   : > { %s3406_s1 = scalar_lea.vmem %s3405_s4, 256  ;;  %p3407_p11 = scmp.lt.s32.totalorder %s561_s21, %s3405_s4 }
  0xdb   : > { %p3402_p1 = pnand %p3400_p3, %p3756_p13  ;;  %p3408_p10 = scmp.lt.s32.totalorder %s3406_s1, %s3399_s30 }
  0xdd   : > { %p3403_p5 = pneg %p3402_p1  ;;  %p3409_p8 = por %p3408_p10, %p3407_p11 }
  0xdf   : > { %p3410_p4 = pnand %p3409_p8, %p3403_p5 }
  0xe1   : > { %3413 = shalt.err (!%p3410_p4)
}
  0xe2   : > { %p4241_p12 = scmp.ne.s32.totalorder %s4230_s25, 0  ;;  %p4242_p2 = scmp.ne.s32.totalorder %s4218_s28, 0 }
  0xe3   : > { %s3888_s20 = sand.u32 (!%p4242_p2), 1, %s3484_s22   ;;  %p4243_p13 = scmp.ne.s32.totalorder (!%p4242_p2), %s4225_s26, 0 }
  0xe4   : > { %3063 = dma.hbm_to_vmem [thread:$0]  (!%p4241_p12), %s3863_s14, 128, %s561_s21, %s3750_s17  }
  0xe5   : > { %577 = sbr.rel (%p4242_p2) target bundleno = 1704 (0x6a8), region = 84  ;;  %s2715_s12 = sshll.u32 (!%p4242_p2), %s3888_s20, 3 }
  0xe6   : > { %s580_s11 = scalar_lea.sflag (!%p4242_p2), [#allocation5], %s3888_s20  ;;  %s3892_s23 = scalar_lea.vmem (!%p4242_p2), [#allocation4], %s2715_s12 }
  0xec   : > { %3459 = dma.done.wait (%p4243_p13), %s580_s11, 128  }
  0xed   : > { %3461 = vsyncadd (%p4243_p13), %s580_s11, 4294967168  ;;  %s588_s28 = sand.u32 1, %s3622_s27   ;;  %s2716_s17 = sshll.u32 %s3888_s20, 2 }
  0xee   : > { %s589_s25 = scalar_lea.sflag [#allocation8], %s588_s28  ;;  %s592_s14 = scalar_lea.vmem [#allocation7], %s2716_s17 }
  0xef   : > { %3463 = dma.done.wait (%p4243_p13), %s589_s25, 192  }
  0xf0   : > { %3465 = vsyncadd (%p4243_p13), %s589_s25, 4294967104  ;;  %s601_s21 = scalar_lea.vmem [#allocation9], %s2715_s12  ;;  %p4244_p8 = scmp.eq.s32.totalorder %s3622_s27, 0 }
  0xf2   : > { %3467 = dma.done.wait (%p4244_p8), [#allocation11], 768   ;;  %p4245_p0 = pmov %p4244_p8 }
  0xf4   : > { %3469 = vsyncadd (%p4245_p0), [#allocation11], 4294966528  ;;  %p4246_p7 = pmov %p4245_p0 }
  0xf5   : > { %p4247_p9 = pmov %p4245_p0 }
  0xf6   : > { %3471 = dma.done.wait (%p4246_p7), [#allocation14], 10368  }
  0xf7   : > { %3473 = vsyncadd (%p4247_p9), [#allocation14], 4294956928  ;;  %vm732_vm0 = vcmask 64512   ;;  %v731_v0 = vld [vmem:[%s601_s21] sm:$0xff]  ;;  %v729_v1 = vld [vmem:[%s4171_s6] sm:$0xff]  ;;  %vm699_vm1 = vcmask 130048   ;;  %v931_v20 = vlaneseq }
  0xf8   : > { %v730_v2 = vld [vmem:[%s4171_s6 + $0x8] sm:$0xff]  ;;  %2927 = vmatprep.subr.mxu0 %v731_v0  ;;  %2929 = vmatprep.mubr.msk.f32.mxu0 %vm732_vm0, %v729_v1  ;;  %v814_v6 = vld [vmem:[#allocation10] sm:$0xff]  ;;  %v816_v8 = vld [vmem:[#allocation10 + $0x10] sm:$0xff]  ;;  %v3505_v10 = vmov 0   ;;  %p681_p6 = scmp.lt.s32.totalorder %s3622_s27, 1  ;;  %vm710_vm2 = vcmask 1040384  }
  0xf9   : > { %v3128_v3 = vld [vmem:[#allocation12] ss:$8 sps:$4 sm:$0xff]   ;;  %2928 = vmatpush3.msra.mxu0 %v731_v0  ;;  %v3130_v4 = vld [vmem:[#allocation12 + $0x4] ss:$8 sps:$4 sm:$0xff]   ;;  %v817_v9 = vld [vmem:[#allocation10 + $0x18] sm:$0xff]  ;;  %s3506_s4 = smov 4  }
  0xfa   : > { %v925_v5 = vld [vmem:[%s592_s14] sm:$0xf]  ;;  %2930 = vmatmul.mubr.msk.f32.vlgmr.msra.gmra.mrb[0].mxu0 %vm732_vm0, %v730_v2  ;;  %954 = vmatprep.subr.bf16.mxu0 %v3130_v4  ;;  %v2987_v13 = vpack.c.bf16 %v817_v9, %v816_v8  ;;  %v1070_v14 = vld [vmem:[%s3892_s23] sm:$0xff]  ;;  %s682_s18 = scalar_select %p681_p6, %s3622_s27, 1  ;;  %v932_v21 = vshrl.u32 %v931_v20, 7  ;;  %vm689_vm3 = vcmask 261120  }
  0xfb   : > { %v815_v7 = vld [vmem:[#allocation10 + $0x8] sm:$0xff]  ;;  %986 = vmatprep.mubr.bf16.mxu0 %v3505_v10  ;;  %v926_v11 = vpack.c.bf16 %v925_v5, %v925_v5  ;;  %955 = vmatpush1.bf16.msra.mxu0 %v3128_v3  ;;  %v1152_v23 = vld [vmem:[%s4170_s5] sm:$0xff]  ;;  %s4248_s21 = sld [smem:[#allocation30_spill]]  ;;  %s3507_s10 = smov 20   ;;  %v1154_v46 = vld [vmem:[%s4170_s5 + $0x10] sm:$0xff]  ;;  %vm723_vm4 = vcmask 556065  }
  0xfc   : > { %v2983_v12 = vpack.c.bf16 %v815_v7, %v814_v6  ;;  %s2832_s15 = sshll.u32 %s682_s18, 4  ;;  %v933_v22 = vsub.s32 0, %v932_v21  ;;  %v1153_v24 = vld [vmem:[%s4170_s5 + $0x8] sm:$0xff]  ;;  %v929_v25 = vld [vmem:[%s4174_s9] sm:$0x3]  ;;  %v937_v26 = vsub.s32 1, %v932_v21 }
  0xfd   : > { %s685_s16 = scalar_lea.vmem %s4168_s3, %s2832_s15  ;;  %v2991_v30 = vpack.c.bf16 %v1153_v24, %v1152_v23  ;;  %s3508_s18 = smov 84   ;;  %v1155_v47 = vld [vmem:[%s4170_s5 + $0x18] sm:$0xff]  ;;  %vm725_vm5 = vcmask 556064   ;;  %v3509_v50 = vmov 0.0   ;;  %v3131_v6 = vld [vmem:[#allocation13 + $0x40] sm:$0xff]   ;;  %v3140_v23 = vld [vmem:[#allocation13 + $0x58] sm:$0xff]  }
  0xfe   : > { %2984 = vmatprep.subr.bf16.mxu1 %v2983_v12  ;;  %2731 = vmatmul.mubr.msk.bf16.vlgmr.msra.gmra.mrb[4].mxu0 %vm699_vm1, %v926_v11  ;;  %v706_v15 = vld [vmem:[%s685_s16] sm:$0xff]  ;;  %v3928_v16 = vld [vmem:[%s685_s16 + $0x8] sm:$0xff]  ;;  %v934_v31 = vrot.slane %v929_v25, %v933_v22  ;;  %v938_v32 = vrot.slane %v929_v25, %v937_v26  ;;  %v2995_v48 = vpack.c.bf16 %v1155_v47, %v1154_v46  ;;  %s3510_s1 = smov 76   ;;  %v3132_v7 = vld [vmem:[#allocation13] sm:$0xff]   ;;  %vm923_vm6 = vcmask 90112   ;;  %s3511_s12 = smov 92  }
  0xff   : > { %2986 = vmatpush3.bf16.msra.mxu1 %v2983_v12  ;;  %v711_v17 = vrot.slane %v706_v15, 7  ;;  %v712_v18 = vrot.slane %v3928_v16, 7  ;;  %687 = vst [vmem:[#allocation2] sm:$0xff] %v3509_v50  ;;  %688 = vst [vmem:[#allocation2 + $0x8] sm:$0xff] %v3509_v50  ;;  %v3133_v8 = vld [vmem:[#allocation13 + $0x48] sm:$0xff]   ;;  %v3135_v11 = vld [vmem:[#allocation13 + $0xd0] sm:$0xff]   ;;  %2877 = vmatprep.subr.bf16.mxu0 %v3131_v6 }
 0x100   : > { %2988 = vmatprep.subr.bf16.mxu1 %v2987_v13  ;;  %690 = vst.msk [vmem:[#allocation2 + $0x10] sm:$0xff] %vm689_vm3, %v3509_v50  ;;  %691 = vst [vmem:[#allocation2 + $0x18] sm:$0xff] %v3509_v50  ;;  %v3137_v12 = vld [vmem:[#allocation13 + $0x90] sm:$0xff]   ;;  %2878 = vmatpush3.bf16.msra.mxu0 %v3132_v7  ;;  %v3145_v24 = vld [vmem:[#allocation13 + $0xa0] sm:$0xff]   ;;  %vm913_vm7 = vcmask 1048161   ;;  %vm915_vm8 = vcmask 97281  }
 0x101   : > { %714 = vrot.lane.b32.xlu1 %v711_v17, %s3506_s4  ;;  %v713_v19 = vsel %vm710_vm2, %v711_v17, %v712_v18  ;;  %s4249_s7 = smov %s4248_s21  ;;  %v1068_v29 = vld [vmem:[%s4248_s21] sm:$0xff]  ;;  %692 = vst [vmem:[#allocation2 + $0x20] sm:$0xff] %v3509_v50  ;;  %693 = vst.msk [vmem:[#allocation2 + $0x28] sm:$0xff] %vm689_vm3, %v3509_v50  ;;  %2879 = vmatprep.subr.bf16.mxu0 %v3133_v8  ;;  %v3141_v17 = vld [vmem:[#allocation13 + $0x98] sm:$0xff]   ;;  %vm999_vm9 = vcmask 680096   ;;  %vm917_vm10 = vcmask 1048160  }
 0x102   : > { %716 = vrot.lane.b32.xlu0 %v713_v19, %s3506_s4  ;;  %v1069_v33 = vld [vmem:[%s4249_s7 + $0x8] sm:$0xff]  ;;  %694 = vst [vmem:[#allocation2 + $0x30] sm:$0x3] %v3509_v50  ;;  %695 = vst [vmem:[#allocation2 + $0x38] sm:$0x3] %v3509_v50  ;;  %v3136_v15 = vld [vmem:[#allocation13 + $0x50] sm:$0xff]  }
 0x103   : > { %2990 = vmatpush3.bf16.msra.mxu1 %v2987_v13  ;;  %698 = vst [vmem:[#allocation3] sm:$0xff] %v3509_v50  ;;  %700 = vst.msk [vmem:[#allocation3 + $0x8] sm:$0xff] %vm699_vm1, %v3509_v50  ;;  %v3139_v13 = vld [vmem:[#allocation13 + $0xd8] sm:$0xff]   ;;  %v3143_v19 = vld [vmem:[#allocation13 + $0xe0] sm:$0xff]   ;;  %vm919_vm11 = vcmask 97280   ;;  %vm696_vm12 = vcmask 254976  }
 0x104   : > { %2943 = vmatprep.subr.mxu1 %v1070_v14  ;;  %701 = vst [vmem:[#allocation3 + $0x10] sm:$0xff] %v3509_v50  ;;  %702 = vst.msk [vmem:[#allocation3 + $0x18] sm:$0xff] %vm699_vm1, %v3509_v50  ;;  %v3138_v22 = vld [vmem:[#allocation13 + $0x10] sm:$0xff]   ;;  %v3142_v25 = vld [vmem:[#allocation13 + $0x18] sm:$0xff]   ;;  %vm1251_vm13 = vcmask 1048289   ;;  %vm1253_vm14 = vcmask 228353  }
 0x105   : > { %703 = vst [vmem:[#allocation3 + $0x20] sm:$0x3] %v3509_v50  ;;  %697 = vst.msk [vmem:[#allocation2 + $0x40] sm:$0x3] %vm696_vm12, %v3509_v50  ;;  %vm1255_vm15 = vcmask 1048288   ;;  %s4250_s23 = sld [smem:[#allocation33_spill]] }
 0x106   : > { %s4251_s25 = sld [smem:[#allocation34_spill]]  ;;  %s3513_s14 = smov 8   ;;  %vm2078_vm12 = vcmask 1047617  }
 0x107   : > { %s2722_s21 = sshll.u32 %s3888_s20, 4  ;;  %s4253_s19 = sld [smem:[#allocation36_spill]] }
 0x108   : > { %s4254_s30 = sld [smem:[#allocation26_spill]]  ;;  %s680_s16 = scalar_lea.vmem [#allocation16], %s2722_s21 }
 0x10e   : > { %p4257_p1 = scmp.ne.s32.totalorder %s4254_s30, 0 }
 0x173   : > { %v715_v49 = vpop.permute.xlu1 %714 }
 0x174   : > { %v717_v51 = vpop.permute.xlu0 %716  ;;  %724 = vst.msk [vmem:[#allocation2] sm:$0xfe] %vm723_vm4, %v715_v49  ;;  %vm1257_vm4 = vcmask 228352  }
 0x175   : > { %726 = vst.msk [vmem:[#allocation2 + $0x18] sm:$0xff] %vm725_vm5, %v717_v51  ;;  %v3160_v51 = vld [vmem:[#allocation13 + $0xc0] sm:$0xff]   ;;  %vm1259_vm5 = vcmask 1041120  }
 0x1cd   : > { %v2931_v27 = vpop.f32.mrb[0].mxu0 }
 0x1ce   : > { %v805_v28 = vpop.f32.mrb[1].mxu0 }
 0x1cf   : > { %2940 = vmatprep.mubr.msk.f32.mxu1 %vm689_vm3, %v805_v28 }
 0x1d0   : > { %2941 = vmatmul.mubr.msk.f32.vlgmr.msra.gmra.mrb[0].mxu1 %vm689_vm3, %v2931_v27  ;;  %v3144_v27 = vld [vmem:[#allocation13 + $0x60] sm:$0xff]  }
 0x1d1   : > { %2944 = vmatpush3.msra.mxu1 %v1070_v14  ;;  %2945 = vmatprep.mubr.msk.f32.mxu1 %vm732_vm0, %v1068_v29  ;;  %v988_v34 = vpop.f32.mrb[4].mxu0  ;;  %v3134_v14 = vld [vmem:[#allocation13 + $0x8] sm:$0xff]   ;;  %v3146_v29 = vld [vmem:[#allocation13 + $0x20] sm:$0xff]  }
 0x1d2   : > { %2992 = vmatprep.subr.bf16.mxu1 %v2991_v30  ;;  %v989_v35 = vadd.f32 %v988_v34, %v934_v31  ;;  %v990_v36 = vpop.f32.mrb[5].mxu0  ;;  %2880 = vmatpush3.bf16.msra.mxu0 %v3134_v14  ;;  %v3148_v34 = vld [vmem:[#allocation13 + $0x68] sm:$0xff]  }
 0x1d3   : > { %v991_v37 = vadd.f32 %v990_v36, %v938_v32  ;;  %v992_v38 = vpop.f32.mrb[6].mxu0  ;;  %2881 = vmatprep.subr.bf16.mxu0 %v3136_v15  ;;  %v3150_v36 = vld [vmem:[#allocation13 + $0x28] sm:$0xff]  }
 0x1d4   : > { %2946 = vmatmul.mubr.msk.f32.vlgmr.msra.gmra.mrb[2].mxu1 %vm732_vm0, %v1069_v33  ;;  %996 = vrot.lane.b32.xlu1 %v989_v35, %s3507_s10  ;;  %v993_v39 = vpop.f32.mrb[7].mxu0  ;;  %v1014_v40 = vrot.slane %v989_v35, 1  ;;  %v1032_v41 = vrot.slane %v989_v35, 2  ;;  %v1050_v42 = vrot.slane %v989_v35, 3  ;;  %v3147_v33 = vld [vmem:[#allocation13 + $0xe8] sm:$0xff]   ;;  %v3152_v38 = vld [vmem:[#allocation13 + $0x70] sm:$0xff]  }
 0x1d5   : > { %2994 = vmatpush3.bf16.msra.mxu1 %v2991_v30  ;;  %1006 = vrot.lane.b32.xlu0 %v991_v37, %s3507_s10  ;;  %v1023_v43 = vrot.slane %v991_v37, 1  ;;  %v1041_v44 = vrot.slane %v991_v37, 2  ;;  %v1059_v45 = vrot.slane %v991_v37, 3  ;;  %v3153_v39 = vld [vmem:[#allocation13 + $0xb0] sm:$0xff]  }
 0x1d6   : > { %2996 = vmatprep.subr.bf16.mxu1 %v2995_v48  ;;  %2882 = vmatpush3.bf16.msra.mxu0 %v3138_v22 }
 0x1d7   : > { %2883 = vmatprep.subr.bf16.mxu0 %v3140_v23 }
 0x1d8   : > { %1001 = vrot.lane.b32.xlu1 %v989_v35, %s3508_s18  ;;  %v3149_v35 = vld [vmem:[#allocation13 + $0xa8] sm:$0xff]  }
 0x1d9   : > { %1015 = vrot.lane.b32.xlu0 %v1014_v40, %s3507_s10  ;;  %2998 = vmatpush3.bf16.msra.mxu1 %v2995_v48  ;;  %v3159_v48 = vld [vmem:[#allocation13 + $0x100] sm:$0xff]  }
 0x1da   : > { %2852 = vmatprep.subr.bf16.mxu1 %v3135_v11  ;;  %2884 = vmatpush3.bf16.msra.mxu0 %v3142_v25 }
 0x1db   : > { %2885 = vmatprep.subr.bf16.mxu0 %v3144_v27 }
 0x1dc   : > { %1010 = vrot.lane.b32.xlu1 %v991_v37, %s3508_s18  ;;  %v3151_v37 = vld [vmem:[#allocation13 + $0xf0] sm:$0xff]  }
 0x1dd   : > { %1033 = vrot.lane.b32.xlu0 %v1032_v41, %s3507_s10 }
 0x1de   : > { %2886 = vmatpush3.bf16.msra.mxu0 %v3146_v29  ;;  %v3167_v29 = vld [vmem:[#allocation13 + $0x1a0] sm:$0xff]  }
 0x1df   : > { %2887 = vmatprep.subr.bf16.mxu0 %v3148_v34  ;;  %v3165_v34 = vld [vmem:[#allocation13 + $0x110] sm:$0xff]  }
 0x1e0   : > { %1019 = vrot.lane.b32.xlu1 %v1014_v40, %s3508_s18  ;;  %v3154_v40 = vld [vmem:[#allocation13 + $0x30] sm:$0xff]  }
 0x1e1   : > { %1051 = vrot.lane.b32.xlu0 %v1050_v42, %s3507_s10 }
 0x1e2   : > { %2888 = vmatpush3.bf16.msra.mxu0 %v3150_v36 }
 0x1e3   : > { %2889 = vmatprep.subr.bf16.mxu0 %v3152_v38 }
 0x1e4   : > { %1037 = vrot.lane.b32.xlu1 %v1032_v41, %s3508_s18  ;;  %v3155_v41 = vld [vmem:[#allocation13 + $0xf8] sm:$0xff]  }
 0x1e5   : > { %1024 = vrot.lane.b32.xlu0 %v1023_v43, %s3507_s10 }
 0x1e6   : > { %2890 = vmatpush3.bf16.msra.mxu0 %v3154_v40 }
 0x1e8   : > { %1055 = vrot.lane.b32.xlu1 %v1050_v42, %s3508_s18  ;;  %v3156_v42 = vld [vmem:[#allocation13 + $0x78] sm:$0xff]  }
 0x1e9   : > { %1042 = vrot.lane.b32.xlu0 %v1041_v44, %s3507_s10  ;;  %2891 = vmatprep.subr.bf16.mxu0 %v3156_v42 }
 0x1ec   : > { %1028 = vrot.lane.b32.xlu1 %v1023_v43, %s3508_s18  ;;  %v3157_v43 = vld [vmem:[#allocation13 + $0xb8] sm:$0xff]  }
 0x1ed   : > { %1060 = vrot.lane.b32.xlu0 %v1059_v45, %s3507_s10  ;;  %s4252_s10 = sld [smem:[#allocation35_spill]] }
 0x1f0   : > { %1046 = vrot.lane.b32.xlu1 %v1041_v44, %s3508_s18  ;;  %v3158_v44 = vld [vmem:[#allocation13 + $0x38] sm:$0xff]  }
 0x1f1   : > { %1064 = vrot.lane.b32.xlu0 %v1059_v45, %s3508_s18  ;;  %2892 = vmatpush3.bf16.msra.mxu0 %v3158_v44 }
 0x1f2   : > { %2967 = vmatprep.subr.bf16.mxu0 %v3509_v50 }
 0x246   : > { %v997_v59 = vpop.permute.xlu1 %996 }
 0x247   : > { %v1007_v60 = vpop.permute.xlu0 %1006 }
 0x24a   : > { %v1002_v61 = vpop.permute.xlu1 %1001 }
 0x24b   : > { %v1016_v62 = vpop.permute.xlu0 %1015 }
 0x24e   : > { %v1011_v63 = vpop.permute.xlu1 %1010 }
 0x24f   : > { %v3983_v0 = vpop.permute.xlu0 %1033 }
 0x252   : > { %v1020_v1 = vpop.permute.xlu1 %1019 }
 0x253   : > { %v3985_v2 = vpop.permute.xlu0 %1051 }
 0x256   : > { %v3987_v3 = vpop.permute.xlu1 %1037 }
 0x257   : > { %v1025_v4 = vpop.permute.xlu0 %1024 }
 0x25a   : > { %v3989_v5 = vpop.permute.xlu1 %1055 }
 0x25b   : > { %v1043_v9 = vpop.permute.xlu0 %1042 }
 0x25e   : > { %v1029_v20 = vpop.permute.xlu1 %1028 }
 0x25f   : > { %v1061_v21 = vpop.permute.xlu0 %1060 }
 0x262   : > { %v1047_v26 = vpop.permute.xlu1 %1046 }
 0x263   : > { %v1065_v28 = vpop.permute.xlu0 %1064 }
 0x2a3   : > { %v2942_v52 = vpop.f32.mrb[0].mxu1 }
 0x2a4   : > { %v902_v53 = vrot.slane %v2942_v52, 7  ;;  %v890_v54 = vpop.f32.mrb[1].mxu1 }
 0x2a5   : > { %v901_v55 = vrot.slane %v890_v54, 7  ;;  %v3163_v54 = vld [vmem:[#allocation13 + $0xc8] sm:$0xff]  }
 0x2a6   : > { %908 = vrot.lane.b32.xlu1 %v902_v53, %s3510_s1 }
 0x2a7   : > { %v2947_v56 = vpop.f32.mrb[2].mxu1  ;;  %904 = vrot.lane.b32.xlu0 %v901_v55, %s3510_s1  ;;  %v903_v57 = vsel %vm710_vm2, %v901_v55, %v902_v53  ;;  %v3162_v53 = vld [vmem:[#allocation13 + $0x108] sm:$0xff]  }
 0x2a8   : > { %v1143_v58 = vpop.f32.mrb[3].mxu1 }
 0x2a9   : > { %2956 = vmatprep.mubr.msk.f32.mxu1 %vm689_vm3, %v1143_v58 }
 0x2aa   : > { %2957 = vmatmul.mubr.msk.f32.vlgmr.msra.gmra.mrb[4].mxu1 %vm689_vm3, %v2947_v56 }
 0x2ab   : > { %906 = vrot.lane.b32.xlu0 %v903_v57, %s3510_s1  ;;  %2853 = vmatpush3.bf16.msra.mxu1 %v3137_v12  ;;  %s2535_s1 = sshll.u32 %s680_s16, 4  ;;  %s4115_s1 = int_to_ptr.vmem [resolvable:$true] %s2535_s1 }
 0x2ac   : > { %2854 = vmatprep.subr.bf16.mxu1 %v3139_v13  ;;  %s3414_s21 = scalar_lea.vmem %s4115_s1, 256 }
 0x2ad   : > { %p3415_p3 = scmp.ne.s32.totalorder %s4115_s1, %s3414_s21 }
 0x2af   : > { %2855 = vmatpush3.bf16.msra.mxu1 %v3141_v17  ;;  %p3416_p5 = pnand %p3415_p3, %p4257_p1 }
 0x2b0   : > { %2856 = vmatprep.subr.bf16.mxu1 %v3143_v19 }
 0x2b1   : > { %p3417_p11 = pneg %p3416_p5 }
 0x2b3   : > { %2857 = vmatpush3.bf16.msra.mxu1 %v3145_v24 }
 0x2b4   : > { %2858 = vmatprep.subr.bf16.mxu1 %v3147_v33 }
 0x2b7   : > { %2859 = vmatpush3.bf16.msra.mxu1 %v3149_v35 }
 0x2b8   : > { %2860 = vmatprep.subr.bf16.mxu1 %v3151_v37 }
 0x2bb   : > { %2861 = vmatpush3.bf16.msra.mxu1 %v3153_v39 }
 0x2bc   : > { %2862 = vmatprep.subr.bf16.mxu1 %v3155_v41  ;;  %v3170_v41 = vld [vmem:[#allocation13 + $0x1a8] sm:$0xff]  }
 0x2bf   : > { %2863 = vmatpush3.bf16.msra.mxu1 %v3157_v43  ;;  %v3166_v43 = vld [vmem:[#allocation13 + $0x118] sm:$0xff]  }
 0x2c0   : > { %2864 = vmatprep.subr.bf16.mxu1 %v3159_v48 }
 0x2c3   : > { %2865 = vmatpush3.bf16.msra.mxu1 %v3160_v51 }
 0x2c4   : > { %2866 = vmatprep.subr.bf16.mxu1 %v3162_v53 }
 0x2c7   : > { %2867 = vmatpush3.bf16.msra.mxu1 %v3163_v54  ;;  %v3169_v54 = vld [vmem:[#allocation13 + $0x120] sm:$0xff]  }
 0x2c8   : > { %2959 = vmatprep.subr.bf16.mxu1 %v3509_v50 }
 0x318   : > { %v3991_v30 = vpop.permute.xlu1 %908 }
 0x319   : > { %924 = vst.msk [vmem:[#allocation2 + $0x38] sm:$0x1] %vm923_vm6, %v3991_v30  ;;  %v905_v31 = vpop.permute.xlu0 %904  ;;  %vm1261_vm6 = vcmask 221184  }
 0x31a   : > { %914 = vst.msk [vmem:[#allocation2] sm:$0xfe] %vm913_vm7, %v905_v31  ;;  %vm727_vm7 = vcmask 548896  }
 0x31b   : > { %916 = vst.msk [vmem:[#allocation2 + $0x8] sm:$0xfe] %vm915_vm8, %v905_v31  ;;  %vm921_vm8 = vcmask 1040992  }
 0x31c   : > { %1067 = vst.msk [vmem:[#allocation2 + $0x38] sm:$0x1] %vm999_vm9, %v1065_v28  ;;  %1000 = vst.msk [vmem:[#allocation2 + $0x9] sm:$0x1] %vm999_vm9, %v997_v59 }
 0x31d   : > { %1004 = vst.msk [vmem:[#allocation2 + $0xa] sm:$0x1] %vm999_vm9, %v1002_v61  ;;  %1009 = vst.msk [vmem:[#allocation2 + $0xb] sm:$0x1] %vm999_vm9, %v1007_v60  ;;  %v907_v32 = vpop.permute.xlu0 %906 }
 0x31e   : > { %1013 = vst.msk [vmem:[#allocation2 + $0xc] sm:$0x1] %vm999_vm9, %v1011_v63  ;;  %1018 = vst.msk [vmem:[#allocation2 + $0xd] sm:$0x1] %vm999_vm9, %v1016_v62 }
 0x31f   : > { %1022 = vst.msk [vmem:[#allocation2 + $0xe] sm:$0x1] %vm999_vm9, %v1020_v1  ;;  %1027 = vst.msk [vmem:[#allocation2 + $0xf] sm:$0x1] %vm999_vm9, %v1025_v4 }
 0x320   : > { %918 = vst.msk [vmem:[#allocation2 + $0x18] sm:$0xff] %vm917_vm10, %v907_v32  ;;  %vm1357_vm10 = vsmask.f32 7424 }
 0x321   : > { %920 = vst.msk [vmem:[#allocation2 + $0x20] sm:$0xff] %vm919_vm11, %v907_v32  ;;  %v1263_v63 = vld [vmem:[#allocation2] sm:$0xff]  ;;  %vm1837_vm11 = vcmask 1046528  }
 0x322   : > { %1031 = vst.msk [vmem:[#allocation2 + $0x20] sm:$0x1] %vm999_vm9, %v1029_v20  ;;  %1036 = vst.msk [vmem:[#allocation2 + $0x21] sm:$0x1] %vm999_vm9, %v3983_v0 }
 0x323   : > { %1040 = vst.msk [vmem:[#allocation2 + $0x22] sm:$0x1] %vm999_vm9, %v3987_v3  ;;  %1045 = vst.msk [vmem:[#allocation2 + $0x23] sm:$0x1] %vm999_vm9, %v1043_v9  ;;  %v3164_v9 = vld [vmem:[#allocation13 + $0x88] sm:$0xff]  }
 0x324   : > { %1049 = vst.msk [vmem:[#allocation2 + $0x24] sm:$0x1] %vm999_vm9, %v1047_v26  ;;  %1054 = vst.msk [vmem:[#allocation2 + $0x25] sm:$0x1] %vm999_vm9, %v3985_v2  ;;  %v3161_v2 = vld [vmem:[#allocation13 + $0x80] sm:$0xff]  }
 0x325   : > { %1058 = vst.msk [vmem:[#allocation2 + $0x26] sm:$0x1] %vm999_vm9, %v3989_v5  ;;  %1063 = vst.msk [vmem:[#allocation2 + $0x27] sm:$0x1] %vm999_vm9, %v1061_v21  ;;  %vm3512_vm9 = vmmov 0  }
 0x327   : > { %v4021_v58 = vld [vmem:[#allocation2 + $0x18] sm:$0xff] }
 0x328   : > { %v1269_v5 = vpack.c.bf16 %v4021_v58, %v1263_v63  ;;  %v3174_v63 = vld [vmem:[#allocation13 + $0x130] sm:$0xff]  }
 0x37d   : > { %v2958_v45 = vpop.f32.mrb[4].mxu1 }
 0x37e   : > { %v1240_v46 = vrot.slane %v2958_v45, 7  ;;  %v1228_v47 = vpop.f32.mrb[5].mxu1 }
 0x37f   : > { %v1239_v49 = vrot.slane %v1228_v47, 7 }
 0x381   : > { %1242 = vrot.lane.b32.xlu0 %v1239_v49, %s3511_s12  ;;  %v1241_v52 = vsel %vm710_vm2, %v1239_v49, %v1240_v46 }
 0x382   : > { %1244 = vrot.lane.b32.xlu1 %v1241_v52, %s3511_s12 }
 0x385   : > { %1246 = vrot.lane.b32.xlu0 %v1240_v46, %s3511_s12  ;;  %v3168_v46 = vld [vmem:[#allocation13 + $0x160] sm:$0xff]   ;;  %s2833_s12 = sshll.u32 %s3622_s27, 8  ;;  %s3514_s27 = smov [#allocation16]  }
 0x386   : > { %718 = vrot.lane.b32.xlu1 %v712_v18, %s3506_s4  ;;  %v1308_v18 = vld [vmem:[#allocation2] sm:$0xfe]  ;;  %s3418_s29 = sshll.u32 %s3514_s27, 4  ;;  %s3419_s29 = int_to_ptr.vmem [resolvable:$false] %s3418_s29 }
 0x387   : > { %v1314_v59 = vpack.c.bf16 %v4021_v58, %v1308_v18  ;;  %s3420_s26 = scalar_lea.vmem %s3419_s29, 512  ;;  %p3421_p10 = scmp.lt.s32.totalorder %s4115_s1, %s3419_s29 }
 0x388   : > { %p3422_p4 = scmp.lt.s32.totalorder %s3420_s26, %s3414_s21 }
 0x389   : > { %v1361_v6 = vshll.u32 %v1314_v59, 16  ;;  %v1359_v24 = vshrl.u32 %v1314_v59, 16 }
 0x38a   : > { %p3423_p12 = por %p3422_p4, %p3421_p10 }
 0x38b   : > { %v1363_v21 = vrot.slane %v1361_v6, 1  ;;  %v3181_v6 = vld [vmem:[#allocation13 + $0x190] sm:$0xff]  }
 0x38c   : > { %p3424_p2 = pnand %p3423_p12, %p3417_p11 }
 0x38d   : > { %v1364_v32 = vor.u32 %v1363_v21, %v1359_v24  ;;  %v3187_v21 = vld [vmem:[#allocation15 + $0x48] sm:$0xff]   ;;  %v3191_v24 = vld [vmem:[#allocation15 + $0x58] sm:$0xff]  }
 0x3f3   : > { %v1243_v55 = vpop.permute.xlu0 %1242 }
 0x3f4   : > { %1252 = vst.msk [vmem:[#allocation2 + $0x8] sm:$0xfe] %vm1251_vm13, %v1243_v55  ;;  %v1245_v56 = vpop.permute.xlu1 %1244  ;;  %vm2080_vm13 = vcmask 64513  }
 0x3f5   : > { %1254 = vst.msk [vmem:[#allocation2 + $0x10] sm:$0xfe] %vm1253_vm14, %v1243_v55  ;;  %vm2082_vm14 = vcmask 1047616  }
 0x3f6   : > { %1256 = vst.msk [vmem:[#allocation2 + $0x20] sm:$0xff] %vm1255_vm15, %v1245_v56  ;;  %vm2085_vm15 = vcmask 1040448  }
 0x3f7   : > { %1258 = vst.msk [vmem:[#allocation2 + $0x28] sm:$0xff] %vm1257_vm4, %v1245_v56  ;;  %v1247_v57 = vpop.permute.xlu0 %1246  ;;  %v3171_v56 = vld [vmem:[#allocation13 + $0x168] sm:$0xff]   ;;  %vm2087_vm4 = vcmask 57344  }
 0x3f8   : > { %1260 = vst.msk [vmem:[#allocation2 + $0x38] sm:$0x1] %vm1259_vm5, %v1247_v57  ;;  %v719_v16 = vpop.permute.xlu1 %718 }
 0x3f9   : > { %1262 = vst.msk [vmem:[#allocation2 + $0x40] sm:$0x1] %vm1261_vm6, %v1247_v57 }
 0x3fa   : > { %728 = vst.msk [vmem:[#allocation2 + $0x30] sm:$0x1] %vm727_vm7, %v719_v16 }
 0x3fb   : > { %922 = vst.msk [vmem:[#allocation2 + $0x30] sm:$0x1] %vm921_vm8, %v3991_v30  ;;  %v1264_v60 = vld [vmem:[#allocation2 + $0x8] sm:$0xff] }
 0x3fc   : > { %v1309_v61 = vld [vmem:[#allocation2 + $0x8] sm:$0xfe]  ;;  %v1310_v4 = vld [vmem:[#allocation2 + $0x10] sm:$0xfe] }
 0x3fd   : > { %v4025_v62 = vld [vmem:[#allocation2 + $0x20] sm:$0xff]  ;;  %v1265_v23 = vld [vmem:[#allocation2 + $0x10] sm:$0xff]  ;;  %v1783_v39 = vld [vmem:[#allocation2 + $0x8] sm:$0xfc] }
 0x3fe   : > { %v1270_v0 = vpack.c.bf16 %v4025_v62, %v1264_v60  ;;  %v1315_v1 = vpack.c.bf16 %v4025_v62, %v1309_v61  ;;  %v4029_v3 = vld [vmem:[#allocation2 + $0x28] sm:$0xff]  ;;  %v1784_v45 = vld [vmem:[#allocation2 + $0x10] sm:$0xfc]  ;;  %v1789_v47 = vpack.c.bf16 %v4025_v62, %v1783_v39  ;;  %v3172_v60 = vld [vmem:[#allocation13 + $0x128] sm:$0xff]  }
 0x3ff   : > { %v1312_v7 = vld [vmem:[#allocation2 + $0x38] sm:$0x1]  ;;  %v1316_v12 = vpack.c.bf16 %v4029_v3, %v1310_v4  ;;  %v1271_v31 = vpack.c.bf16 %v4029_v3, %v1265_v23  ;;  %v1790_v53 = vpack.c.bf16 %v4029_v3, %v1784_v45  ;;  %v3173_v62 = vld [vmem:[#allocation13 + $0x170] sm:$0xff]   ;;  %v3178_v3 = vld [vmem:[#allocation13 + $0x140] sm:$0xff]  }
 0x400   : > { %1732 = vmatprep.mubr.bf16.mxu0 %v1270_v0  ;;  %v1373_v8 = vshll.u32 %v1315_v1, 16  ;;  %v1318_v11 = vpack.c.bf16 %v1312_v7, %v1312_v7  ;;  %v1371_v13 = vshrl.u32 %v1315_v1, 16  ;;  %v1313_v17 = vld [vmem:[#allocation2 + $0x40] sm:$0x1]  ;;  %v1786_v35 = vld [vmem:[#allocation2 + $0x38] sm:$0x3] }
 0x401   : > { %1733 = vmatmul.mubr.bf16.vlgmr.msra.gmra.mrb[8].mxu0 %v1269_v5  ;;  %v1319_v27 = vpack.c.bf16 %v1313_v17, %v1313_v17  ;;  %v1385_v28 = vshll.u32 %v1316_v12, 16  ;;  %v1787_v40 = vld [vmem:[#allocation2 + $0x40] sm:$0x3]  ;;  %v1792_v42 = vpack.c.bf16 %v1786_v35, %v1786_v35  ;;  %v1383_v44 = vshrl.u32 %v1316_v12, 16  ;;  %v3175_v0 = vld [vmem:[#allocation13 + $0x178] sm:$0xff]   ;;  %v3179_v4 = vld [vmem:[#allocation13 + $0x188] sm:$0xff]  }
 0x402   : > { %2968 = vmatpush3.bf16.msra.mxu0 %v3161_v2  ;;  %v1375_v14 = vrot.slane %v1373_v8, 1  ;;  %2971 = vmatprep.mubr.msk.bf16.mxu0 %vm3512_vm9, %v3509_v50  ;;  %v1311_v15 = vld [vmem:[#allocation2 + $0x30] sm:$0x1]  ;;  %v1378_v19 = vshll.u32 %v1318_v11, 16  ;;  %v1793_v48 = vpack.c.bf16 %v1787_v40, %v1787_v40  ;;  %v1841_v55 = vrot.slane %v1789_v47, 1  ;;  %v3176_v1 = vld [vmem:[#allocation13 + $0x138] sm:$0xff]  }
 0x403   : > { %2969 = vmatprep.subr.bf16.mxu0 %v3509_v50  ;;  %v1317_v20 = vpack.c.bf16 %v1311_v15, %v1311_v15  ;;  %v1387_v37 = vrot.slane %v1385_v28, 1  ;;  %v1390_v38 = vshll.u32 %v1319_v27, 16  ;;  %v1842_v52 = vrot.slane %v1792_v42, 1  ;;  %v3177_v2 = vld [vmem:[#allocation13 + $0x180] sm:$0xff]   ;;  %v3180_v5 = vld [vmem:[#allocation13 + $0x148] sm:$0xff]   ;;  %v3182_v8 = vld [vmem:[#allocation13 + $0x150] sm:$0xff]  }
 0x404   : > { %v1376_v22 = vor.u32 %v1375_v14, %v1371_v13  ;;  %v1380_v25 = vrot.slane %v1378_v19, 1  ;;  %v1845_v57 = vrot.slane %v1793_v48, 1  ;;  %v1844_v59 = vrot.slane %v1790_v53, 1  ;;  %v1785_v7 = vld [vmem:[#allocation2 + $0x30] sm:$0x3]  ;;  %v3184_v13 = vld [vmem:[#allocation13 + $0x158] sm:$0xff]  }
 0x405   : > { %v1366_v26 = vshll.u32 %v1317_v20, 16  ;;  %v1388_v49 = vor.u32 %v1387_v37, %v1383_v44  ;;  %v1392_v51 = vrot.slane %v1390_v38, 1  ;;  %v1843_v18 = vsel %vm1837_vm11, %v1841_v55, %v1842_v52  ;;  %v1782_v12 = vld [vmem:[#allocation2] sm:$0xfc]  ;;  %v3189_v23 = vld [vmem:[#allocation15 + $0x50] sm:$0xff]   ;;  %v3194_v28 = vld [vmem:[#allocation15 + $0x28] sm:$0xff]  }
 0x406   : > { %2970 = vmatpush3.bf16.msra.mxu0 %v3164_v9  ;;  %v1381_v30 = vsel %vm1357_vm10, %v1376_v22, %v1380_v25  ;;  %v1846_v61 = vsel %vm1837_vm11, %v1844_v59, %v1845_v57  ;;  %v3183_v9 = vld [vmem:[#allocation13 + $0x198] sm:$0xff]   ;;  %v1791_v11 = vpack.c.bf16 %v1785_v7, %v1785_v7  ;;  %v1788_v14 = vpack.c.bf16 %v4021_v58, %v1782_v12  ;;  %v3185_v20 = vld [vmem:[#allocation15] sm:$0xff]   ;;  %v3188_v58 = vld [vmem:[#allocation15 + $0x10] sm:$0xff]  }
 0x407   : > { %v1368_v33 = vrot.slane %v1366_v26, 1  ;;  %2975 = vmatprep.subr.bf16.mxu0 %v3509_v50  ;;  %1539 = vmatprep.mubr.bf16.mxu1 %v1381_v30  ;;  %v1393_v16 = vsel %vm1357_vm10, %v1388_v49, %v1392_v51  ;;  %v3186_v22 = vld [vmem:[#allocation15 + $0x8] sm:$0xff]   ;;  %v3190_v25 = vld [vmem:[#allocation15 + $0x18] sm:$0xff]   ;;  %v3193_v26 = vld [vmem:[#allocation15 + $0x60] sm:$0xff]  }
 0x408   : > { %v1839_v15 = vrot.slane %v1791_v11, 1  ;;  %v1838_v17 = vrot.slane %v1788_v14, 1  ;;  %v3192_v27 = vld [vmem:[#allocation15 + $0x20] sm:$0xff]   ;;  %v3196_v59 = vld [vmem:[#allocation15 + $0x30] sm:$0xff]  }
 0x409   : > { %2972 = vmatmul.mubr.msk.bf16.vlgmr.msra.gmra.mrb[12].mxu0 %vm689_vm3, %v1271_v31  ;;  %v1369_v36 = vsel %vm1357_vm10, %v1364_v32, %v1368_v33  ;;  %v3200_v7 = vld [vmem:[#allocation15 + $0x40] sm:$0xff]  }
 0x40a   : > { %1540 = vmatmul.mubr.bf16.vlgmr.msra.gmra.mrb[8].mxu1 %v1369_v36  ;;  %2976 = vmatpush3.bf16.msra.mxu0 %v3167_v29  ;;  %v1840_v19 = vsel %vm1837_vm11, %v1838_v17, %v1839_v15  ;;  %v3201_v15 = vld [vmem:[#allocation15 + $0x80] sm:$0xff]  }
 0x40b   : > { %2960 = vmatpush3.bf16.msra.mxu1 %v3165_v34  ;;  %2963 = vmatprep.mubr.msk.bf16.mxu1 %vm3512_vm9, %v3509_v50 }
 0x40c   : > { %2961 = vmatprep.subr.bf16.mxu1 %v3509_v50  ;;  %2977 = vmatprep.subr.bf16.mxu0 %v3509_v50 }
 0x40d   : > { %2979 = vmatprep.mubr.msk.bf16.mxu0 %vm3512_vm9, %v3509_v50 }
 0x40e   : > { %2978 = vmatpush3.bf16.msra.mxu0 %v3170_v41 }
 0x40f   : > { %2962 = vmatpush3.bf16.msra.mxu1 %v3166_v43  ;;  %2320 = vmatprep.subr.bf16.mxu0 %v3505_v10 }
 0x410   : > { %2902 = vmatprep.subr.bf16.mxu1 %v3168_v46 }
 0x412   : > { %2964 = vmatmul.mubr.msk.bf16.vlgmr.msra.gmra.mrb[12].mxu1 %vm689_vm3, %v1393_v16 }
 0x413   : > { %2903 = vmatpush3.bf16.msra.mxu1 %v3169_v54  ;;  %1992 = vmatprep.mubr.bf16.mxu1 %v1843_v18  ;;  %v3195_v18 = vld [vmem:[#allocation15 + $0x68] sm:$0xff]  }
 0x414   : > { %2904 = vmatprep.subr.bf16.mxu1 %v3171_v56 }
 0x415   : > { %2980 = vmatmul.mubr.msk.bf16.vlgmr.msra.gmra.mrb[12].mxu0 %vm689_vm3, %v1846_v61  ;;  %vm704_vm3 = vcmask 123904  }
 0x416   : > { %2321 = vmatpush1.bf16.msra.mxu0 %v3185_v20  ;;  %705 = vst.msk [vmem:[#allocation3 + $0x28] sm:$0x3] %vm704_vm3, %v3509_v50 }
 0x417   : > { %2905 = vmatpush3.bf16.msra.mxu1 %v3172_v60  ;;  %2322 = vmatprep.subr.bf16.mxu0 %v3505_v10 }
 0x418   : > { %2906 = vmatprep.subr.bf16.mxu1 %v3173_v62  ;;  %v2793_v62 = vld [vmem:[%s4250_s23] ss:$0 sm:$0xff]  ;;  %s4255_s23 = sld [smem:[#allocation37_spill]] }
 0x41a   : > { %2323 = vmatpush1.bf16.msra.mxu0 %v3186_v22 }
 0x41b   : > { %2907 = vmatpush3.bf16.msra.mxu1 %v3174_v63  ;;  %2324 = vmatprep.subr.bf16.mxu0 %v3505_v10 }
 0x41c   : > { %2908 = vmatprep.subr.bf16.mxu1 %v3175_v0 }
 0x41e   : > { %2325 = vmatpush1.bf16.msra.mxu0 %v3188_v58  ;;  %s4256_s28 = smov %s4255_s23  ;;  %s4120_s17 = scalar_lea.hbm %s4255_s23, %s2833_s12 }
 0x41f   : > { %2909 = vmatpush3.bf16.msra.mxu1 %v3176_v1  ;;  %2326 = vmatprep.subr.bf16.mxu0 %v3505_v10  ;;  %v2794_v1 = vld [vmem:[%s4251_s25] ss:$0 sm:$0xff]  ;;  %s2522_s25 = scalar_lea.sflag [#allocation6], %s3888_s20 }
 0x420   : > { %2910 = vmatprep.subr.bf16.mxu1 %v3177_v2  ;;  %v3197_v2 = vld [vmem:[#allocation15 + $0x70] sm:$0xff]  }
 0x422   : > { %2327 = vmatpush1.bf16.msra.mxu0 %v3190_v25 }
 0x423   : > { %2911 = vmatpush3.bf16.msra.mxu1 %v3178_v3  ;;  %2328 = vmatprep.subr.bf16.mxu0 %v3505_v10  ;;  %v3198_v3 = vld [vmem:[#allocation15 + $0x38] sm:$0xff]  }
 0x424   : > { %2912 = vmatprep.subr.bf16.mxu1 %v3179_v4 }
 0x426   : > { %2329 = vmatpush1.bf16.msra.mxu0 %v3192_v27 }
 0x427   : > { %2913 = vmatpush3.bf16.msra.mxu1 %v3180_v5  ;;  %2330 = vmatprep.subr.bf16.mxu0 %v3505_v10 }
 0x428   : > { %2914 = vmatprep.subr.bf16.mxu1 %v3181_v6  ;;  %v3199_v6 = vld [vmem:[#allocation15 + $0x78] sm:$0xff]  }
 0x42a   : > { %2331 = vmatpush1.bf16.msra.mxu0 %v3194_v28 }
 0x42b   : > { %2915 = vmatpush3.bf16.msra.mxu1 %v3182_v8  ;;  %2332 = vmatprep.subr.bf16.mxu0 %v3505_v10 }
 0x42c   : > { %2916 = vmatprep.subr.bf16.mxu1 %v3183_v9 }
 0x42e   : > { %2333 = vmatpush1.bf16.msra.mxu0 %v3196_v59 }
 0x42f   : > { %2917 = vmatpush3.bf16.msra.mxu1 %v3184_v13  ;;  %2334 = vmatprep.subr.bf16.mxu0 %v3505_v10 }
 0x430   : > { %2222 = vmatprep.subr.bf16.mxu1 %v3505_v10 }
 0x432   : > { %1993 = vmatmul.mubr.bf16.vlgmr.msra.gmra.mrb[16].mxu1 %v1840_v19  ;;  %2335 = vmatpush1.bf16.msra.mxu0 %v3198_v3  ;;  %v3203_v19 = vld [vmem:[#allocation15 + $0x88] sm:$0xff]  }
 0x433   : > { %2223 = vmatpush1.bf16.msra.mxu1 %v3187_v21  ;;  %2336 = vmatprep.subr.bf16.mxu0 %v3505_v10 }
 0x434   : > { %2224 = vmatprep.subr.bf16.mxu1 %v3505_v10 }
 0x436   : > { %2337 = vmatpush1.bf16.msra.mxu0 %v3200_v7 }
 0x437   : > { %2225 = vmatpush1.bf16.msra.mxu1 %v3189_v23  ;;  %2456 = vmatprep.subr.bf16.mxu0 %v3505_v10 }
 0x438   : > { %2226 = vmatprep.subr.bf16.mxu1 %v3505_v10 }
 0x43b   : > { %2227 = vmatpush1.bf16.msra.mxu1 %v3191_v24  ;;  %v3202_v24 = vld [vmem:[#allocation15 + $0x90] sm:$0xff]  }
 0x43c   : > { %2228 = vmatprep.subr.bf16.mxu1 %v3505_v10 }
 0x43f   : > { %2229 = vmatpush1.bf16.msra.mxu1 %v3193_v26 }
 0x440   : > { %2230 = vmatprep.subr.bf16.mxu1 %v3505_v10 }
 0x443   : > { %2231 = vmatpush1.bf16.msra.mxu1 %v3195_v18  ;;  %v3205_v18 = vld [vmem:[#allocation15 + $0xa0] sm:$0xff]  }
 0x444   : > { %2232 = vmatprep.subr.bf16.mxu1 %v3505_v10 }
 0x447   : > { %2233 = vmatpush1.bf16.msra.mxu1 %v3197_v2 }
 0x448   : > { %2234 = vmatprep.subr.bf16.mxu1 %v3505_v10 }
 0x44b   : > { %2235 = vmatpush1.bf16.msra.mxu1 %v3199_v6 }
 0x44c   : > { %2236 = vmatprep.subr.bf16.mxu1 %v3505_v10 }
 0x44f   : > { %2237 = vmatpush1.bf16.msra.mxu1 %v3201_v15 }
 0x450   : > { %2238 = vmatprep.subr.bf16.mxu1 %v3505_v10 }
 0x453   : > { %2239 = vmatpush1.bf16.msra.mxu1 %v3203_v19 }
 0x4d4   : > { %v2893_v29 = vpop.f32.mrb[8].mxu0 }
 0x4d5   : > { %v2894_v30 = vpop.f32.mrb[9].mxu0 }
 0x4d6   : > { %v2895_v31 = vadd.f32 %v2894_v30, %v2893_v29  ;;  %v2896_v32 = vpop.f32.mrb[10].mxu0 }
 0x4d7   : > { %v2897_v33 = vpop.f32.mrb[11].mxu0 }
 0x4d8   : > { %v2898_v34 = vadd.f32 %v2897_v33, %v2896_v32 }
 0x4dd   : > { %v2868_v35 = vpop.f32.mrb[8].mxu1 }
 0x4de   : > { %v2869_v36 = vpop.f32.mrb[9].mxu1 }
 0x4df   : > { %v2870_v37 = vadd.f32 %v2869_v36, %v2868_v35  ;;  %v2871_v38 = vpop.f32.mrb[10].mxu1 }
 0x4e0   : > { %v2872_v39 = vpop.f32.mrb[11].mxu1 }
 0x4e1   : > { %v2873_v40 = vadd.f32 %v2872_v39, %v2871_v38 }
 0x4e5   : > { %v1582_v41 = vpop.f32.mrb[12].mxu1 }
 0x4e6   : > { %v1583_v42 = vadd.f32 %v2870_v37, %v1582_v41  ;;  %v2965_v43 = vpop.f32.mrb[13].mxu1 }
 0x4e7   : > { %v1585_v44 = vpop.f32.mrb[14].mxu1 }
 0x4e8   : > { %v1735_v45 = vadd.f32 %v2895_v31, %v1583_v42  ;;  %v1586_v46 = vadd.f32 %v2873_v40, %v1585_v44  ;;  %v2966_v47 = vpop.f32.mrb[15].mxu1  ;;  %v2035_v48 = vpop.f32.mrb[12].mxu0 }
 0x4e9   : > { %v2981_v49 = vpop.f32.mrb[13].mxu0 }
 0x4ea   : > { %v1738_v51 = vadd.f32 %v2898_v34, %v1586_v46  ;;  %v2038_v52 = vpop.f32.mrb[14].mxu0  ;;  %v3204_v46 = vld [vmem:[#allocation15 + $0x98] sm:$0xff]  }
 0x4eb   : > { %v2982_v53 = vpop.f32.mrb[15].mxu0 }
 0x505   : > { %v2918_v54 = vpop.f32.mrb[16].mxu1 }
 0x506   : > { %v2919_v55 = vpop.f32.mrb[17].mxu1 }
 0x507   : > { %v2920_v56 = vadd.f32 %v2919_v55, %v2918_v54  ;;  %v2921_v57 = vpop.f32.mrb[18].mxu1 }
 0x508   : > { %v2922_v16 = vpop.f32.mrb[19].mxu1 }
 0x509   : > { %v3001_v60 = vadd.f32 %v2920_v56, %v1735_v45  ;;  %v2923_v61 = vadd.f32 %v2922_v16, %v2921_v57 }
 0x50b   : > { %v3002_v63 = vadd.f32 %v3001_v60, %v2035_v48  ;;  %v3005_v0 = vadd.f32 %v2923_v61, %v1738_v51  ;;  %v3206_v60 = vld [vmem:[#allocation15 + $0xa8] sm:$0xff]   ;;  %v3207_v61 = vld [vmem:[#allocation15 + $0xb0] sm:$0xff]  }
 0x50d   : > { %v2051_v4 = vmul.f32 %v3002_v63, %v2793_v62  ;;  %v3006_v5 = vadd.f32 %v3005_v0, %v2038_v52  ;;  %v3209_v63 = vld [vmem:[#allocation15 + $0xc0] sm:$0xff]  }
 0x50f   : > { %v2052_v8 = vmul.f32 %v3006_v5, %v2793_v62  ;;  %v2060_v9 = vadd.f32 %v2794_v1, %v2051_v4  ;;  %v3208_v62 = vld [vmem:[#allocation15 + $0xb8] sm:$0xff]   ;;  %v3211_v5 = vld [vmem:[#allocation15 + $0xd0] sm:$0xff]  }
 0x511   : > { %v2061_v11 = vadd.f32 %v2794_v1, %v2052_v8  ;;  %v2062_v12 = vmax.f32 %v2060_v9, 0.0  ;;  %v3210_v1 = vld [vmem:[#allocation15 + $0xc8] sm:$0xff]  }
 0x513   : > { %v2066_v13 = vrot.slane %v2062_v12, 7  ;;  %v2063_v50 = vmax.f32 %v2061_v11, 0.0 }
 0x515   : > { %2069 = vrot.lane.b32.xlu1 %v2066_v13, %s3513_s14  ;;  %v2067_v14 = vrot.slane %v2063_v50, 7 }
 0x517   : > { %v2068_v17 = vsel %vm710_vm2, %v2066_v13, %v2067_v14 }
 0x518   : > { %2071 = vrot.lane.b32.xlu0 %v2068_v17, %s3513_s14 }
 0x519   : > { %2073 = vrot.lane.b32.xlu1 %v2067_v14, %s3513_s14  ;;  %v2825_v14 = vld [vmem:[%s4252_s10] ss:$0 sm:$0xff] }
 0x587   : > { %v2070_v20 = vpop.permute.xlu1 %2069 }
 0x588   : > { %2079 = vst.msk [vmem:[#allocation3] sm:$0xfe] %vm2078_vm12, %v2070_v20 }
 0x589   : > { %2081 = vst.msk [vmem:[#allocation3 + $0x8] sm:$0xfe] %vm2080_vm13, %v2070_v20 }
 0x58a   : > { %v2072_v21 = vpop.permute.xlu0 %2071 }
 0x58b   : > { %2083 = vst.msk [vmem:[#allocation3 + $0x10] sm:$0xff] %vm2082_vm14, %v2072_v21  ;;  %v2074_v22 = vpop.permute.xlu1 %2073 }
 0x58c   : > { %2084 = vst.msk [vmem:[#allocation3 + $0x18] sm:$0xff] %vm732_vm0, %v2072_v21 }
 0x58d   : > { %2086 = vst.msk [vmem:[#allocation3 + $0x20] sm:$0x1] %vm2085_vm15, %v2074_v22 }
 0x58e   : > { %2088 = vst.msk [vmem:[#allocation3 + $0x28] sm:$0x1] %vm2087_vm4, %v2074_v22 }
 0x58f   : > { %v2089_v58 = vld [vmem:[#allocation3] sm:$0xff] }
 0x590   : > { %v2090_v23 = vld [vmem:[#allocation3 + $0x8] sm:$0xff]  ;;  %v2113_v29 = vld [vmem:[#allocation3] sm:$0xfe] }
 0x591   : > { %v2362_v25 = vld [vmem:[#allocation3 + $0x8] sm:$0xfc]  ;;  %v2361_v2 = vld [vmem:[#allocation3] sm:$0xfc] }
 0x592   : > { %v2114_v26 = vld [vmem:[#allocation3 + $0x8] sm:$0xfe]  ;;  %v4087_v28 = vld [vmem:[#allocation3 + $0x10] sm:$0xff] }
 0x593   : > { %v2092_v27 = vld [vmem:[#allocation3 + $0x18] sm:$0xff]  ;;  %v2093_v31 = vpack.c.bf16 %v4087_v28, %v2089_v58  ;;  %v2117_v39 = vpack.c.bf16 %v4087_v28, %v2113_v29  ;;  %v2365_v3 = vpack.c.bf16 %v4087_v28, %v2361_v2 }
 0x594   : > { %v2094_v30 = vpack.c.bf16 %v2092_v27, %v2090_v23  ;;  %v2366_v33 = vpack.c.bf16 %v2092_v27, %v2362_v25  ;;  %v2118_v35 = vpack.c.bf16 %v2092_v27, %v2114_v26  ;;  %v2115_v36 = vld [vmem:[#allocation3 + $0x20] sm:$0x1] }
 0x595   : > { %v2364_v32 = vld [vmem:[#allocation3 + $0x28] sm:$0x3]  ;;  %v2119_v40 = vpack.c.bf16 %v2115_v36, %v2115_v36  ;;  %v2143_v45 = vshll.u32 %v2117_v39, 16  ;;  %v2141_v53 = vshrl.u32 %v2117_v39, 16  ;;  %v2363_v0 = vld [vmem:[#allocation3 + $0x20] sm:$0x3] }
 0x596   : > { %v2116_v34 = vld [vmem:[#allocation3 + $0x28] sm:$0x1]  ;;  %v2368_v37 = vpack.c.bf16 %v2364_v32, %v2364_v32  ;;  %2814 = vmatprep.mubr.msk.bf16.mxu0 %vm699_vm1, %v2094_v30  ;;  %v2395_v41 = vrot.slane %v2366_v33, 1  ;;  %v2155_v42 = vshll.u32 %v2118_v35, 16  ;;  %v2153_v47 = vshrl.u32 %v2118_v35, 16 }
 0x597   : > { %v2120_v38 = vpack.c.bf16 %v2116_v34, %v2116_v34  ;;  %2353 = vmatmul.mubr.bf16.vlgmr.msra.gmra.mrb[16].mxu0 %v2093_v31  ;;  %v2148_v49 = vshll.u32 %v2119_v40, 16  ;;  %v2145_v54 = vrot.slane %v2143_v45, 1  ;;  %v2367_v4 = vpack.c.bf16 %v2363_v0, %v2363_v0 }
 0x598   : > { %v2396_v43 = vrot.slane %v2368_v37, 1  ;;  %2457 = vmatpush1.bf16.msra.mxu0 %v3202_v24  ;;  %v2157_v48 = vrot.slane %v2155_v42, 1  ;;  %v2392_v6 = vrot.slane %v2365_v3, 1 }
 0x599   : > { %v2160_v44 = vshll.u32 %v2120_v38, 16  ;;  %2458 = vmatprep.subr.bf16.mxu0 %v3505_v10  ;;  %v2150_v56 = vrot.slane %v2148_v49, 1  ;;  %v2146_v57 = vor.u32 %v2145_v54, %v2141_v53  ;;  %v2393_v7 = vrot.slane %v2367_v4, 1 }
 0x59a   : > { %v2397_v51 = vsel %vm1837_vm11, %v2395_v41, %v2396_v43  ;;  %v2158_v55 = vor.u32 %v2157_v48, %v2153_v47 }
 0x59b   : > { %v2162_v52 = vrot.slane %v2160_v44, 1  ;;  %2824 = vmatprep.mubr.msk.bf16.mxu0 %vm699_vm1, %v2397_v51  ;;  %v2151_v59 = vsel %vm1357_vm10, %v2146_v57, %v2150_v56  ;;  %v2394_v8 = vsel %vm1837_vm11, %v2392_v6, %v2393_v7 }
 0x59c   : > { %2459 = vmatpush1.bf16.msra.mxu0 %v3204_v46 }
 0x59d   : > { %v2163_v16 = vsel %vm1357_vm10, %v2158_v55, %v2162_v52  ;;  %2460 = vmatprep.subr.bf16.mxu0 %v3505_v10 }
 0x59e   : > { %2804 = vmatprep.mubr.msk.bf16.mxu1 %vm699_vm1, %v2163_v16 }
 0x59f   : > { %2255 = vmatmul.mubr.bf16.vlgmr.msra.gmra.mrb[20].mxu1 %v2151_v59 }
 0x5a0   : > { %2461 = vmatpush1.bf16.msra.mxu0 %v3205_v18 }
 0x5a1   : > { %2462 = vmatprep.subr.bf16.mxu0 %v3505_v10 }
 0x5a4   : > { %2463 = vmatpush1.bf16.msra.mxu0 %v3206_v60 }
 0x5a5   : > { %2464 = vmatprep.subr.bf16.mxu0 %v3505_v10 }
 0x5a8   : > { %2465 = vmatpush1.bf16.msra.mxu0 %v3207_v61 }
 0x5a9   : > { %2466 = vmatprep.subr.bf16.mxu0 %v3505_v10 }
 0x5ac   : > { %2467 = vmatpush1.bf16.msra.mxu0 %v3208_v62 }
 0x5ad   : > { %2468 = vmatprep.subr.bf16.mxu0 %v3505_v10 }
 0x5b0   : > { %2469 = vmatpush1.bf16.msra.mxu0 %v3209_v63 }
 0x5b1   : > { %2470 = vmatprep.subr.bf16.mxu0 %v3505_v10 }
 0x5b4   : > { %2471 = vmatpush1.bf16.msra.mxu0 %v3210_v1 }
 0x5b5   : > { %2472 = vmatprep.subr.bf16.mxu0 %v3505_v10  ;;  %v2826_v10 = vld [vmem:[%s4253_s19] ss:$0 sm:$0xff] }
 0x5b8   : > { %2473 = vmatpush1.bf16.msra.mxu0 %v3211_v5 }
 0x5bb   : > { %2489 = vmatmul.mubr.bf16.vlgmr.msra.gmra.mrb[16].mxu0 %v2394_v8 }
 0x672   : > { %v2256_v9 = vpop.f32.mrb[20].mxu1 }
 0x673   : > { %v2258_v11 = vpop.f32.mrb[21].mxu1 }
 0x674   : > { %v2259_v12 = vpop.f32.mrb[22].mxu1 }
 0x675   : > { %v2261_v13 = vpop.f32.mrb[23].mxu1 }
 0x68e   : > { %v2490_v50 = vpop.f32.mrb[16].mxu0 }
 0x68f   : > { %v3007_v15 = vadd.f32 %v2490_v50, %v2256_v9  ;;  %v2492_v17 = vpop.f32.mrb[17].mxu0 }
 0x690   : > { %v2493_v19 = vpop.f32.mrb[18].mxu0 }
 0x691   : > { %v2506_v20 = vmul.f32 %v3007_v15, %v2825_v14  ;;  %v3008_v21 = vadd.f32 %v2493_v19, %v2259_v12  ;;  %v2495_v22 = vpop.f32.mrb[19].mxu0 }
 0x693   : > { %v2515_v23 = vadd.f32 %v2826_v10, %v2506_v20  ;;  %v2507_v58 = vmul.f32 %v3008_v21, %v2825_v14 }
 0x695   : > { %v2517_v24 = vmax.f32 %v2515_v23, 0.0  ;;  %v2516_v25 = vadd.f32 %v2826_v10, %v2507_v58 }
 0x697   : > { %2519 = vst [vmem:[%s680_s16] sm:$0xff] %v2517_v24  ;;  %v2518_v26 = vmax.f32 %v2516_v25, 0.0 }
 0x699   : > { %2520 = vst [vmem:[%s680_s16 + $0x8] sm:$0xff] %v2518_v26 }
 0x69a   : > { %3427 = shalt.err (!%p3424_p2)
}
 0x69b   : > { %s3428_s10 = scalar_lea.hbm %s4120_s17, 256  ;;  %s3432_s19 = scalar_lea.hbm %s4256_s28, 512 }
 0x69c   : > { %p3429_p13 = scmp.ne.s32.totalorder %s4120_s17, %s3428_s10  ;;  %p3433_p7 = scmp.lt.u32.totalorder %s4120_s17, %s4256_s28 }
 0x69d   : > { %p3434_p9 = scmp.lt.u32.totalorder %s3432_s19, %s3428_s10  ;;  %p3436_p3 = scmp.lt.u32.totalorder %s3428_s10, %s4120_s17 }
 0x69e   : > { %p3430_p8 = pnand %p3429_p13, %p4257_p1 }
 0x69f   : > { %p3435_p6 = por %p3434_p9, %p3433_p7 }
 0x6a0   : > { %p3431_p0 = pneg %p3430_p8 }
 0x6a1   : > { %p3437_p5 = por %p3436_p3, %p3435_p6 }
 0x6a3   : > { %p3438_p11 = pnand %p3437_p5, %p3431_p0 }
 0x6a5   : > { %3441 = shalt.err (!%p3438_p11)
}
 0x6a6   : > { %s3515_s4 = smov 128  }
 0x6a7   : > { %3039 = dma.vmem_to_hbm [thread:$0]  (%p4257_p1), %s4115_s1, 256, %s4120_s17, %s2522_s25, %s3515_s4, %s3515_s4, %s3513_s14  }
 0x6a8 PF: > { %s4258_s11 = sld [smem:[#allocation22_spill]]  ;;  %s4259_s23 = sld [smem:[#allocation27_spill]] }
 0x6a9   : > { %p4261_p4 = scmp.ge.s32.totalorder %s3492_s24, 2 }
 0x6ae   : > { %s2550_s21 = sand.u32 1, %s4258_s11   ;;  %p4260_p10 = scmp.ne.s32.totalorder %s4259_s23, 0 }
 0x6af   : > { %s2551_s27 = scalar_lea.sflag [#allocation6], %s2550_s21 }
 0x6b0   : > { %p3065_p12 = pnand %p4261_p4, %p4260_p10 }
 0x6b2   : > { %3475 = dma.done.wait (!%p3065_p12), %s2551_s27, 256  }
 0x6b3   : > { %3477 = vsyncadd (!%p3065_p12), %s2551_s27, 4294967040  ;;  %s4262_s24 = sld [smem:[#allocation24_spill]]  ;;  %s4263_s30 = sld [smem:[#allocation23_spill]] }
 0x6b4   : > { %s4264_s23 = sld [smem:[#allocation25_spill]]  ;;  %s4265_s21 = smov %s3484_s22 }
 0x6b9   : > { %p34_p2 = scmp.ge.s32.totalorder %s4262_s24, 4   ;;  %s4266_s22 = smov %s4263_s30 }
 0x6bb   :  { %36 = sbr.rel (!%p34_p2) target bundleno = 20 (0x14), region = 176 }
 0x6c2   :  { %2556 = vsyncpa [#allocation5], 1 }
 0x6c3   :  { %2558 = vsyncpa [#allocation5 + $0x1], 1 }
 0x6c4   :  { %2559 = vsyncpa [#allocation8], 1 }
 0x6c5   :  { %2561 = vsyncpa [#allocation8 + $0x1], 1 }
 0x6c6   :  { %2562 = vsyncpa [#allocation11], 1 }
 0x6c7   :  { %2563 = vsyncpa [#allocation14], 1 }
 0x6c8   :  { %2564 = vsyncpa [#allocation6], 1 }
 0x6c9   :  { %2566 = vsyncpa [#allocation6 + $0x1], 1 }

</bundles_post_ra>
